<compile_context>
chip_gen: v6e
topology: v6e:2x2x1
jax: 0.10.0
libtpu: 0.0.40
codegen_flags: <defaults>
</compile_context>

<pallas_src>
import jax
import jax.numpy as jnp
from jax.experimental import pallas as pl
from jax.experimental.pallas import tpu as pltpu

LANES = 128


def _round_up(n, m):
    return ((n + m - 1) // m) * m


# ---------------------------------------------------------------------------
# Fused kernel
# ---------------------------------------------------------------------------
def make_fused_kernel(num_gin, num_gru, num_graphs, nodes_per_graph,
                      out_dim, w_meta, b_meta):
    """All weights arrive packed in two slabs; static layout metadata is baked
    into the kernel so every slice is a compile-time constant."""
    H = out_dim

    def kernel(adj_ref, x_ref, w_ref, b_ref, o_ref):
        def W(name):                        # weight block [rows, cols]
            off, r, c = w_meta[name]
            return w_ref[off:off + r, :c]

        def B(name):                        # bias row (1, cols)
            i, c = b_meta[name]
            return b_ref[i:i + 1, :c]

        adj = adj_ref[...]                  # A' = A + (1+eps)*I, loaded ONCE
        z = x_ref[...]

        # ----- GIN layers: conv -> relu -> BatchNorm1d (batch statistics) -----
        for li in range(num_gin):
            w1, b1 = W(f"gin{li}_w1"), B(f"gin{li}_b1")
            w2, b2 = W(f"gin{li}_w2"), B(f"gin{li}_b2")
            gamma, beta = B(f"gin{li}_gamma"), B(f"gin{li}_beta")
            in_d, out_d = w_meta[f"gin{li}_w1"][1], w_meta[f"gin{li}_w1"][2]

            # Run the NxN adjacency matmul at the narrower of (in_dim, out_dim):
            #   (A' @ z) @ w1  ==  A' @ (z @ w1)
            if out_d < in_d:
                h = jnp.dot(adj,
                            jnp.dot(z, w1, preferred_element_type=jnp.float32),
                            preferred_element_type=jnp.float32) + b1
            else:
                h = jnp.dot(jnp.dot(adj, z, preferred_element_type=jnp.float32),
                            w1, preferred_element_type=jnp.float32) + b1
            h = jnp.maximum(h, 0.0)
            z = jnp.dot(h, w2, preferred_element_type=jnp.float32) + b2
            z = jnp.maximum(z, 0.0)

            # BatchNorm with folded affine: independent reductions + 2 VPU ops.
            mean = jnp.mean(z, axis=0, keepdims=True)
            mean_sq = jnp.mean(z * z, axis=0, keepdims=True)
            var = jnp.maximum(mean_sq - mean * mean, 0.0)   # cancellation guard
            scale = gamma * jax.lax.rsqrt(var + 1e-5)
            shift = beta - mean * scale
            z = z * scale + shift

        # ----- global max pool: graphs are contiguous, fixed node count; the
        # reshape splits the sublane axis at a tile boundary (npg == 8) so the
        # segment max is a single XLU sublane reduce. -----
        feat = z.shape[-1]
        pooled = jnp.max(z.reshape(num_graphs, nodes_per_graph, feat), axis=1)

        # ----- stacked GRU, seq_len == 1, h0 == 0 for every layer -----
        # One packed [In, 3H] matmul per layer; gates lane-sliced at 0/H/2H.
        h = pooled
        for li in range(num_gru):
            g = jnp.dot(h, W(f"gru{li}_w"),
                        preferred_element_type=jnp.float32) + B(f"gru{li}_brzn")
            r = jax.nn.sigmoid(g[:, :H])
            zg = jax.nn.sigmoid(g[:, H:2 * H])
            n = jnp.tanh(g[:, 2 * H:3 * H] + r * B(f"gru{li}_bhn"))
            h = (1.0 - zg) * n              # h' = (1-z)*n + z*h_prev, h_prev==0

        # ----- project MLP (3x Linear+ReLU) + final Linear(64,1) -----
        g1 = jnp.maximum(
            jnp.dot(h, W("proj_w1"), preferred_element_type=jnp.float32)
            + B("proj_b1"), 0.0)
        g2 = jnp.maximum(
            jnp.dot(g1, W("proj_w2"), preferred_element_type=jnp.float32)
            + B("proj_b2"), 0.0)
        g3 = jnp.maximum(
            jnp.dot(g2, W("proj_w3"), preferred_element_type=jnp.float32)
            + B("proj_b3"), 0.0)
        # proj_w4 / proj_b4 are zero-padded to 128 lanes -> lane-dense store.
        o_ref[...] = (jnp.dot(g3, W("proj_w4"),
                              preferred_element_type=jnp.float32) + B("proj_b4"))

    return kernel


# ---------------------------------------------------------------------------
# Parameters (deterministic synthetic init, PyTorch-like packed GRU gates)
# ---------------------------------------------------------------------------
def init_params(key, node_features, hidden_dim, out_dim, num_layers):
    keys = iter(jax.random.split(key, 64))

    def dense(shape):
        return (0.1 * jax.random.normal(next(keys), shape)).astype(jnp.float32)

    gin = []
    in_d = node_features
    for _ in range(num_layers - 1):
        gin.append(dict(w1=dense((in_d, hidden_dim)), b1=dense((1, hidden_dim)),
                        w2=dense((hidden_dim, hidden_dim)), b2=dense((1, hidden_dim)),
                        gamma=1.0 + dense((1, hidden_dim)), beta=dense((1, hidden_dim))))
        in_d = hidden_dim
    hd4 = hidden_dim // 4
    gin.append(dict(w1=dense((in_d, hd4)), b1=dense((1, hd4)),
                    w2=dense((hd4, hd4)), b2=dense((1, hd4)),
                    gamma=1.0 + dense((1, hd4)), beta=dense((1, hd4))))

    gru = []
    in_g = hd4
    for _ in range(4):  # GRU(hidden//4, out_dim, num_layers=4)
        # NOTE: real PyTorch weight_ih_l* is [3H, In]; these synthetic weights
        # are stored [In, 3H] (gate order r, z, n).  Loading trained weights
        # would need a transpose here.  weight_hh is omitted: seq_len == 1 and
        # h0 == 0 -> h @ W_hh == 0; only bias_hh contributes.
        gru.append(dict(wih=dense((in_g, 3 * out_dim)),
                        bih=dense((1, 3 * out_dim)),
                        bhh=dense((1, 3 * out_dim))))
        in_g = out_dim

    proj = dict(w1=dense((out_dim, hidden_dim)), b1=dense((1, hidden_dim)),
                w2=dense((hidden_dim, hidden_dim)), b2=dense((1, hidden_dim)),
                w3=dense((hidden_dim, 64)), b3=dense((1, 64)),
                w4=dense((64, 1)), b4=dense((1, 1)))
    return dict(gin=gin, gru=gru, proj=proj)


# ---------------------------------------------------------------------------
# Pack all params into two 128-lane slabs (cuts ~45 input DMAs to 2)
# ---------------------------------------------------------------------------
def _pack_params(params, out_dim):
    H = out_dim
    w_blocks, b_rows = [], []

    for li, lp in enumerate(params["gin"]):
        w_blocks += [(f"gin{li}_w1", lp["w1"]), (f"gin{li}_w2", lp["w2"])]
        b_rows += [(f"gin{li}_b1", lp["b1"]), (f"gin{li}_b2", lp["b2"]),
                   (f"gin{li}_gamma", lp["gamma"]), (f"gin{li}_beta", lp["beta"])]

    for li, lp in enumerate(params["gru"]):
        wih, bih, bhh = lp["wih"], lp["bih"], lp["bhh"]
        # Fold b_hh into the r/z gate biases (h0 == 0), keep b_hn separate
        # (scaled by r inside tanh).  Gate order (r, z, n).
        b_rzn = jnp.concatenate(
            [bih[:, :2 * H] + bhh[:, :2 * H], bih[:, 2 * H:]], axis=1)
        w_blocks.append((f"gru{li}_w", wih))
        b_rows += [(f"gru{li}_brzn", b_rzn), (f"gru{li}_bhn", bhh[:, 2 * H:])]

    pp = params["proj"]
    # zero-pad Linear(64, 1) to 128 output lanes -> unmasked lane-dense store.
    w4p = jnp.zeros((pp["w4"].shape[0], LANES), jnp.float32).at[:, :1].set(pp["w4"])
    b4p = jnp.zeros((1, LANES), jnp.float32).at[:, :1].set(pp["b4"])
    w_blocks += [("proj_w1", pp["w1"]), ("proj_w2", pp["w2"]),
                 ("proj_w3", pp["w3"]), ("proj_w4", w4p)]
    b_rows += [("proj_b1", pp["b1"]), ("proj_b2", pp["b2"]),
               ("proj_b3", pp["b3"]), ("proj_b4", b4p)]

    # Weight slab: row-stacked, each block lane-padded to 128 and sublane-padded
    # to a multiple of 8 so every static row offset stays tile-aligned.
    w_meta, padded, row_off = {}, [], 0
    for name, w in w_blocks:
        r, c = w.shape
        rp = _round_up(r, 8)
        padded.append(jnp.zeros((rp, LANES), jnp.float32).at[:r, :c].set(w))
        w_meta[name] = (row_off, r, c)
        row_off += rp
    w_slab = jnp.concatenate(padded, axis=0)

    # Bias slab: one (rows, 128) array; row i = bias i lane-padded to 128.
    b_meta, rows = {}, []
    for i, (name, b) in enumerate(b_rows):
        c = b.shape[1]
        rows.append(jnp.zeros((1, LANES), jnp.float32).at[:, :c].set(b))
        b_meta[name] = (i, c)
    n_rows = _round_up(len(rows), 8)
    rows += [jnp.zeros((1, LANES), jnp.float32)] * (n_rows - len(rows))
    b_slab = jnp.concatenate(rows, axis=0)

    return w_slab, b_slab, w_meta, b_meta


# ---------------------------------------------------------------------------
# Full forward (single pallas_call, 4 inputs, 1 output)
# ---------------------------------------------------------------------------
def gin_gru_forward(params, x, adj, num_graphs, nodes_per_graph, out_dim):
    n = x.shape[0]
    # Fold (1 + eps) * I into the adjacency (eps = 0): agg = A' @ z.
    adj_hat = adj + jnp.eye(n, dtype=adj.dtype)
    w_slab, b_slab, w_meta, b_meta = _pack_params(params, out_dim)

    kernel = make_fused_kernel(len(params["gin"]), len(params["gru"]),
                               num_graphs, nodes_per_graph, out_dim,
                               w_meta, b_meta)
    out_padded = pl.pallas_call(
        kernel,
        out_shape=jax.ShapeDtypeStruct((num_graphs, LANES), jnp.float32),
        in_specs=[pl.BlockSpec(memory_space=pltpu.MemorySpace.VMEM)] * 4,
        out_specs=pl.BlockSpec(memory_space=pltpu.MemorySpace.VMEM),
        compiler_params=pltpu.CompilerParams(
            vmem_limit_bytes=32 * 1024 * 1024),   # fits v7x's 64 MiB VMEM too
    )(adj_hat, x, w_slab, b_slab)
    return out_padded[:, 0]                                   # [num_graphs]


# ---------------------------------------------------------------------------
if __name__ == "__main__":
    node_features = 4
    hidden_dim = 32
    out_dim = 16
    num_layers = 3           # GIN layers: 4->32, 32->32, 32->8
    num_graphs = 4
    nodes_per_graph = 8      # == one sublane tile -> layout-free pooling reshape
    N = num_graphs * nodes_per_graph

    key = jax.random.PRNGKey(0)
    k_x, k_p = jax.random.split(key)

    # node features
    x = jax.random.normal(k_x, (N, node_features), dtype=jnp.float32)

    # deterministic bidirectional ring edges within each (contiguous) graph
    src, dst = [], []
    for g in range(num_graphs):
        base = g * nodes_per_graph
        for i in range(nodes_per_graph):
            a = base + i
            b = base + (i + 1) % nodes_per_graph
            src += [a, b]
            dst += [b, a]
    edge_index = jnp.array([src, dst], dtype=jnp.int32)       # [2, 64]

    # dense adjacency: A[dst, src] = multiplicity (aggregation at target node)
    adj = jnp.zeros((N, N), jnp.float32).at[edge_index[1], edge_index[0]].add(1.0)

    params = init_params(k_p, node_features, hidden_dim, out_dim, num_layers)

    out = gin_gru_forward(params, x, adj, num_graphs, nodes_per_graph, out_dim)
    jax.block_until_ready(out)
    assert out.shape == (num_graphs,)
    print("KERNEL_OK")
</pallas_src>

<mosaic_0001>
module attributes {stable_mosaic.version = 11 : i64} {
  func.func @kernel(%arg0: memref<32x32xf32, #tpu.memory_space<vmem>>, %arg1: memref<32x4xf32, #tpu.memory_space<vmem>>, %arg2: memref<344x128xf32, #tpu.memory_space<vmem>>, %arg3: memref<24x128xf32, #tpu.memory_space<vmem>>, %arg4: memref<4x128xf32, #tpu.memory_space<vmem>>) attributes {dimension_semantics = [], scalar_prefetch = 0 : i64, scratch_operands = 0 : i64, tpu.core_type = #tpu.core_type<tc>} {
    %c0 = arith.constant 0 : index
    %c0_0 = arith.constant 0 : index
    %0 = vector.load %arg0[%c0, %c0_0] : memref<32x32xf32, #tpu.memory_space<vmem>>, vector<32x32xf32>
    %c0_1 = arith.constant 0 : index
    %c0_2 = arith.constant 0 : index
    %1 = vector.load %arg1[%c0_1, %c0_2] : memref<32x4xf32, #tpu.memory_space<vmem>>, vector<32x4xf32>
    %c0_3 = arith.constant 0 : index
    %c0_4 = arith.constant 0 : index
    %2 = vector.load %arg2[%c0_3, %c0_4] : memref<344x128xf32, #tpu.memory_space<vmem>>, vector<4x32xf32>
    %c0_5 = arith.constant 0 : index
    %c0_6 = arith.constant 0 : index
    %3 = vector.load %arg3[%c0_5, %c0_6] : memref<24x128xf32, #tpu.memory_space<vmem>>, vector<1x32xf32>
    %c8 = arith.constant 8 : index
    %c0_7 = arith.constant 0 : index
    %4 = vector.load %arg2[%c8, %c0_7] : memref<344x128xf32, #tpu.memory_space<vmem>>, vector<32x32xf32>
    %c1 = arith.constant 1 : index
    %c0_8 = arith.constant 0 : index
    %5 = vector.load %arg3[%c1, %c0_8] : memref<24x128xf32, #tpu.memory_space<vmem>>, vector<1x32xf32>
    %c2 = arith.constant 2 : index
    %c0_9 = arith.constant 0 : index
    %6 = vector.load %arg3[%c2, %c0_9] : memref<24x128xf32, #tpu.memory_space<vmem>>, vector<1x32xf32>
    %c3 = arith.constant 3 : index
    %c0_10 = arith.constant 0 : index
    %7 = vector.load %arg3[%c3, %c0_10] : memref<24x128xf32, #tpu.memory_space<vmem>>, vector<1x32xf32>
    %cst = arith.constant dense<0.000000e+00> : vector<32x4xf32>
    %8 = tpu.matmul %0, %1, %cst {dimension_numbers = #tpu.dot_dimension_numbers<[1], [0], [0], [1], [0, 0, 1, 1], [], []>} : vector<32x32xf32>, vector<32x4xf32>, vector<32x4xf32> -> vector<32x4xf32>
    %cst_11 = arith.constant dense<0.000000e+00> : vector<32x32xf32>
    %9 = tpu.matmul %8, %2, %cst_11 {dimension_numbers = #tpu.dot_dimension_numbers<[1], [0], [0], [1], [0, 0, 1, 1], [], []>} : vector<32x4xf32>, vector<4x32xf32>, vector<32x32xf32> -> vector<32x32xf32>
    %10 = vector.broadcast %3 : vector<1x32xf32> to vector<32x32xf32>
    %11 = arith.addf %9, %10 : vector<32x32xf32>
    %cst_12 = arith.constant 0.000000e+00 : f32
    %12 = vector.broadcast %cst_12 : f32 to vector<32x32xf32>
    %13 = arith.maximumf %11, %12 : vector<32x32xf32>
    %cst_13 = arith.constant dense<0.000000e+00> : vector<32x32xf32>
    %14 = tpu.matmul %13, %4, %cst_13 {dimension_numbers = #tpu.dot_dimension_numbers<[1], [0], [0], [1], [0, 0, 1, 1], [], []>} : vector<32x32xf32>, vector<32x32xf32>, vector<32x32xf32> -> vector<32x32xf32>
    %15 = vector.broadcast %5 : vector<1x32xf32> to vector<32x32xf32>
    %16 = arith.addf %14, %15 : vector<32x32xf32>
    %cst_14 = arith.constant 0.000000e+00 : f32
    %17 = vector.broadcast %cst_14 : f32 to vector<32x32xf32>
    %18 = arith.maximumf %16, %17 : vector<32x32xf32>
    %cst_15 = arith.constant dense<0.000000e+00> : vector<32xf32>
    %19 = vector.multi_reduction <add>, %18, %cst_15 [0] : vector<32x32xf32> to vector<32xf32>
    %20 = vector.shape_cast %19 : vector<32xf32> to vector<1x32xf32>
    %cst_16 = arith.constant 3.200000e+01 : f32
    %21 = vector.broadcast %cst_16 : f32 to vector<1x32xf32>
    %22 = arith.divf %20, %21 : vector<1x32xf32>
    %23 = arith.mulf %18, %18 : vector<32x32xf32>
    %cst_17 = arith.constant dense<0.000000e+00> : vector<32xf32>
    %24 = vector.multi_reduction <add>, %23, %cst_17 [0] : vector<32x32xf32> to vector<32xf32>
    %25 = vector.shape_cast %24 : vector<32xf32> to vector<1x32xf32>
    %cst_18 = arith.constant 3.200000e+01 : f32
    %26 = vector.broadcast %cst_18 : f32 to vector<1x32xf32>
    %27 = arith.divf %25, %26 : vector<1x32xf32>
    %28 = arith.mulf %22, %22 : vector<1x32xf32>
    %29 = arith.subf %27, %28 : vector<1x32xf32>
    %cst_19 = arith.constant 0.000000e+00 : f32
    %30 = vector.broadcast %cst_19 : f32 to vector<1x32xf32>
    %31 = arith.maximumf %29, %30 : vector<1x32xf32>
    %cst_20 = arith.constant 9.99999974E-6 : f32
    %32 = vector.broadcast %cst_20 : f32 to vector<1x32xf32>
    %33 = arith.addf %31, %32 : vector<1x32xf32>
    %34 = math.rsqrt %33 : vector<1x32xf32>
    %35 = arith.mulf %6, %34 : vector<1x32xf32>
    %36 = arith.mulf %22, %35 : vector<1x32xf32>
    %37 = arith.subf %7, %36 : vector<1x32xf32>
    %38 = vector.broadcast %35 : vector<1x32xf32> to vector<32x32xf32>
    %39 = arith.mulf %18, %38 : vector<32x32xf32>
    %40 = vector.broadcast %37 : vector<1x32xf32> to vector<32x32xf32>
    %41 = arith.addf %39, %40 : vector<32x32xf32>
    %c40 = arith.constant 40 : index
    %c0_21 = arith.constant 0 : index
    %42 = vector.load %arg2[%c40, %c0_21] : memref<344x128xf32, #tpu.memory_space<vmem>>, vector<32x32xf32>
    %c4 = arith.constant 4 : index
    %c0_22 = arith.constant 0 : index
    %43 = vector.load %arg3[%c4, %c0_22] : memref<24x128xf32, #tpu.memory_space<vmem>>, vector<1x32xf32>
    %c72 = arith.constant 72 : index
    %c0_23 = arith.constant 0 : index
    %44 = vector.load %arg2[%c72, %c0_23] : memref<344x128xf32, #tpu.memory_space<vmem>>, vector<32x32xf32>
    %c5 = arith.constant 5 : index
    %c0_24 = arith.constant 0 : index
    %45 = vector.load %arg3[%c5, %c0_24] : memref<24x128xf32, #tpu.memory_space<vmem>>, vector<1x32xf32>
    %c6 = arith.constant 6 : index
    %c0_25 = arith.constant 0 : index
    %46 = vector.load %arg3[%c6, %c0_25] : memref<24x128xf32, #tpu.memory_space<vmem>>, vector<1x32xf32>
    %c7 = arith.constant 7 : index
    %c0_26 = arith.constant 0 : index
    %47 = vector.load %arg3[%c7, %c0_26] : memref<24x128xf32, #tpu.memory_space<vmem>>, vector<1x32xf32>
    %cst_27 = arith.constant dense<0.000000e+00> : vector<32x32xf32>
    %48 = tpu.matmul %0, %41, %cst_27 {dimension_numbers = #tpu.dot_dimension_numbers<[1], [0], [0], [1], [0, 0, 1, 1], [], []>} : vector<32x32xf32>, vector<32x32xf32>, vector<32x32xf32> -> vector<32x32xf32>
    %cst_28 = arith.constant dense<0.000000e+00> : vector<32x32xf32>
    %49 = tpu.matmul %48, %42, %cst_28 {dimension_numbers = #tpu.dot_dimension_numbers<[1], [0], [0], [1], [0, 0, 1, 1], [], []>} : vector<32x32xf32>, vector<32x32xf32>, vector<32x32xf32> -> vector<32x32xf32>
    %50 = vector.broadcast %43 : vector<1x32xf32> to vector<32x32xf32>
    %51 = arith.addf %49, %50 : vector<32x32xf32>
    %cst_29 = arith.constant 0.000000e+00 : f32
    %52 = vector.broadcast %cst_29 : f32 to vector<32x32xf32>
    %53 = arith.maximumf %51, %52 : vector<32x32xf32>
    %cst_30 = arith.constant dense<0.000000e+00> : vector<32x32xf32>
    %54 = tpu.matmul %53, %44, %cst_30 {dimension_numbers = #tpu.dot_dimension_numbers<[1], [0], [0], [1], [0, 0, 1, 1], [], []>} : vector<32x32xf32>, vector<32x32xf32>, vector<32x32xf32> -> vector<32x32xf32>
    %55 = vector.broadcast %45 : vector<1x32xf32> to vector<32x32xf32>
    %56 = arith.addf %54, %55 : vector<32x32xf32>
    %cst_31 = arith.constant 0.000000e+00 : f32
    %57 = vector.broadcast %cst_31 : f32 to vector<32x32xf32>
    %58 = arith.maximumf %56, %57 : vector<32x32xf32>
    %cst_32 = arith.constant dense<0.000000e+00> : vector<32xf32>
    %59 = vector.multi_reduction <add>, %58, %cst_32 [0] : vector<32x32xf32> to vector<32xf32>
    %60 = vector.shape_cast %59 : vector<32xf32> to vector<1x32xf32>
    %cst_33 = arith.constant 3.200000e+01 : f32
    %61 = vector.broadcast %cst_33 : f32 to vector<1x32xf32>
    %62 = arith.divf %60, %61 : vector<1x32xf32>
    %63 = arith.mulf %58, %58 : vector<32x32xf32>
    %cst_34 = arith.constant dense<0.000000e+00> : vector<32xf32>
    %64 = vector.multi_reduction <add>, %63, %cst_34 [0] : vector<32x32xf32> to vector<32xf32>
    %65 = vector.shape_cast %64 : vector<32xf32> to vector<1x32xf32>
    %cst_35 = arith.constant 3.200000e+01 : f32
    %66 = vector.broadcast %cst_35 : f32 to vector<1x32xf32>
    %67 = arith.divf %65, %66 : vector<1x32xf32>
    %68 = arith.mulf %62, %62 : vector<1x32xf32>
    %69 = arith.subf %67, %68 : vector<1x32xf32>
    %cst_36 = arith.constant 0.000000e+00 : f32
    %70 = vector.broadcast %cst_36 : f32 to vector<1x32xf32>
    %71 = arith.maximumf %69, %70 : vector<1x32xf32>
    %cst_37 = arith.constant 9.99999974E-6 : f32
    %72 = vector.broadcast %cst_37 : f32 to vector<1x32xf32>
    %73 = arith.addf %71, %72 : vector<1x32xf32>
    %74 = math.rsqrt %73 : vector<1x32xf32>
    %75 = arith.mulf %46, %74 : vector<1x32xf32>
    %76 = arith.mulf %62, %75 : vector<1x32xf32>
    %77 = arith.subf %47, %76 : vector<1x32xf32>
    %78 = vector.broadcast %75 : vector<1x32xf32> to vector<32x32xf32>
    %79 = arith.mulf %58, %78 : vector<32x32xf32>
    %80 = vector.broadcast %77 : vector<1x32xf32> to vector<32x32xf32>
    %81 = arith.addf %79, %80 : vector<32x32xf32>
    %c104 = arith.constant 104 : index
    %c0_38 = arith.constant 0 : index
    %82 = vector.load %arg2[%c104, %c0_38] : memref<344x128xf32, #tpu.memory_space<vmem>>, vector<32x8xf32>
    %c8_39 = arith.constant 8 : index
    %c0_40 = arith.constant 0 : index
    %83 = vector.load %arg3[%c8_39, %c0_40] : memref<24x128xf32, #tpu.memory_space<vmem>>, vector<1x8xf32>
    %c136 = arith.constant 136 : index
    %c0_41 = arith.constant 0 : index
    %84 = vector.load %arg2[%c136, %c0_41] : memref<344x128xf32, #tpu.memory_space<vmem>>, vector<8x8xf32>
    %c9 = arith.constant 9 : index
    %c0_42 = arith.constant 0 : index
    %85 = vector.load %arg3[%c9, %c0_42] : memref<24x128xf32, #tpu.memory_space<vmem>>, vector<1x8xf32>
    %c10 = arith.constant 10 : index
    %c0_43 = arith.constant 0 : index
    %86 = vector.load %arg3[%c10, %c0_43] : memref<24x128xf32, #tpu.memory_space<vmem>>, vector<1x8xf32>
    %c11 = arith.constant 11 : index
    %c0_44 = arith.constant 0 : index
    %87 = vector.load %arg3[%c11, %c0_44] : memref<24x128xf32, #tpu.memory_space<vmem>>, vector<1x8xf32>
    %cst_45 = arith.constant dense<0.000000e+00> : vector<32x8xf32>
    %88 = tpu.matmul %81, %82, %cst_45 {dimension_numbers = #tpu.dot_dimension_numbers<[1], [0], [0], [1], [0, 0, 1, 1], [], []>} : vector<32x32xf32>, vector<32x8xf32>, vector<32x8xf32> -> vector<32x8xf32>
    %cst_46 = arith.constant dense<0.000000e+00> : vector<32x8xf32>
    %89 = tpu.matmul %0, %88, %cst_46 {dimension_numbers = #tpu.dot_dimension_numbers<[1], [0], [0], [1], [0, 0, 1, 1], [], []>} : vector<32x32xf32>, vector<32x8xf32>, vector<32x8xf32> -> vector<32x8xf32>
    %90 = vector.broadcast %83 : vector<1x8xf32> to vector<32x8xf32>
    %91 = arith.addf %89, %90 : vector<32x8xf32>
    %cst_47 = arith.constant 0.000000e+00 : f32
    %92 = vector.broadcast %cst_47 : f32 to vector<32x8xf32>
    %93 = arith.maximumf %91, %92 : vector<32x8xf32>
    %cst_48 = arith.constant dense<0.000000e+00> : vector<32x8xf32>
    %94 = tpu.matmul %93, %84, %cst_48 {dimension_numbers = #tpu.dot_dimension_numbers<[1], [0], [0], [1], [0, 0, 1, 1], [], []>} : vector<32x8xf32>, vector<8x8xf32>, vector<32x8xf32> -> vector<32x8xf32>
    %95 = vector.broadcast %85 : vector<1x8xf32> to vector<32x8xf32>
    %96 = arith.addf %94, %95 : vector<32x8xf32>
    %cst_49 = arith.constant 0.000000e+00 : f32
    %97 = vector.broadcast %cst_49 : f32 to vector<32x8xf32>
    %98 = arith.maximumf %96, %97 : vector<32x8xf32>
    %cst_50 = arith.constant dense<0.000000e+00> : vector<8xf32>
    %99 = vector.multi_reduction <add>, %98, %cst_50 [0] : vector<32x8xf32> to vector<8xf32>
    %100 = vector.shape_cast %99 : vector<8xf32> to vector<1x8xf32>
    %cst_51 = arith.constant 3.200000e+01 : f32
    %101 = vector.broadcast %cst_51 : f32 to vector<1x8xf32>
    %102 = arith.divf %100, %101 : vector<1x8xf32>
    %103 = arith.mulf %98, %98 : vector<32x8xf32>
    %cst_52 = arith.constant dense<0.000000e+00> : vector<8xf32>
    %104 = vector.multi_reduction <add>, %103, %cst_52 [0] : vector<32x8xf32> to vector<8xf32>
    %105 = vector.shape_cast %104 : vector<8xf32> to vector<1x8xf32>
    %cst_53 = arith.constant 3.200000e+01 : f32
    %106 = vector.broadcast %cst_53 : f32 to vector<1x8xf32>
    %107 = arith.divf %105, %106 : vector<1x8xf32>
    %108 = arith.mulf %102, %102 : vector<1x8xf32>
    %109 = arith.subf %107, %108 : vector<1x8xf32>
    %cst_54 = arith.constant 0.000000e+00 : f32
    %110 = vector.broadcast %cst_54 : f32 to vector<1x8xf32>
    %111 = arith.maximumf %109, %110 : vector<1x8xf32>
    %cst_55 = arith.constant 9.99999974E-6 : f32
    %112 = vector.broadcast %cst_55 : f32 to vector<1x8xf32>
    %113 = arith.addf %111, %112 : vector<1x8xf32>
    %114 = math.rsqrt %113 : vector<1x8xf32>
    %115 = arith.mulf %86, %114 : vector<1x8xf32>
    %116 = arith.mulf %102, %115 : vector<1x8xf32>
    %117 = arith.subf %87, %116 : vector<1x8xf32>
    %118 = vector.broadcast %115 : vector<1x8xf32> to vector<32x8xf32>
    %119 = arith.mulf %98, %118 : vector<32x8xf32>
    %120 = vector.broadcast %117 : vector<1x8xf32> to vector<32x8xf32>
    %121 = arith.addf %119, %120 : vector<32x8xf32>
    %122 = vector.shape_cast %121 : vector<32x8xf32> to vector<4x8x8xf32>
    %cst_56 = arith.constant dense<0xFF800000> : vector<4x8xf32>
    %123 = vector.multi_reduction <maximumf>, %122, %cst_56 [1] : vector<4x8x8xf32> to vector<4x8xf32>
    %c144 = arith.constant 144 : index
    %c0_57 = arith.constant 0 : index
    %124 = vector.load %arg2[%c144, %c0_57] : memref<344x128xf32, #tpu.memory_space<vmem>>, vector<8x48xf32>
    %cst_58 = arith.constant dense<0.000000e+00> : vector<4x48xf32>
    %125 = tpu.matmul %123, %124, %cst_58 {dimension_numbers = #tpu.dot_dimension_numbers<[1], [0], [0], [1], [0, 0, 1, 1], [], []>} : vector<4x8xf32>, vector<8x48xf32>, vector<4x48xf32> -> vector<4x48xf32>
    %c12 = arith.constant 12 : index
    %c0_59 = arith.constant 0 : index
    %126 = vector.load %arg3[%c12, %c0_59] : memref<24x128xf32, #tpu.memory_space<vmem>>, vector<1x48xf32>
    %127 = vector.broadcast %126 : vector<1x48xf32> to vector<4x48xf32>
    %128 = arith.addf %125, %127 : vector<4x48xf32>
    %129 = vector.extract_strided_slice %128 {offsets = [0, 0], sizes = [4, 16], strides = [1, 1]} : vector<4x48xf32> to vector<4x16xf32>
    %130 = arith.negf %129 : vector<4x16xf32>
    %131 = math.exp %130 : vector<4x16xf32>
    %cst_60 = arith.constant 1.000000e+00 : f32
    %132 = vector.broadcast %cst_60 : f32 to vector<4x16xf32>
    %133 = arith.addf %132, %131 : vector<4x16xf32>
    %134 = arith.divf %132, %133 : vector<4x16xf32>
    %135 = vector.extract_strided_slice %128 {offsets = [0, 16], sizes = [4, 16], strides = [1, 1]} : vector<4x48xf32> to vector<4x16xf32>
    %136 = arith.negf %135 : vector<4x16xf32>
    %137 = math.exp %136 : vector<4x16xf32>
    %cst_61 = arith.constant 1.000000e+00 : f32
    %138 = vector.broadcast %cst_61 : f32 to vector<4x16xf32>
    %139 = arith.addf %138, %137 : vector<4x16xf32>
    %140 = arith.divf %138, %139 : vector<4x16xf32>
    %141 = vector.extract_strided_slice %128 {offsets = [0, 32], sizes = [4, 16], strides = [1, 1]} : vector<4x48xf32> to vector<4x16xf32>
    %c13 = arith.constant 13 : index
    %c0_62 = arith.constant 0 : index
    %142 = vector.load %arg3[%c13, %c0_62] : memref<24x128xf32, #tpu.memory_space<vmem>>, vector<1x16xf32>
    %143 = vector.broadcast %142 : vector<1x16xf32> to vector<4x16xf32>
    %144 = arith.mulf %134, %143 : vector<4x16xf32>
    %145 = arith.addf %141, %144 : vector<4x16xf32>
    %146 = math.tanh %145 : vector<4x16xf32>
    %cst_63 = arith.constant 1.000000e+00 : f32
    %147 = vector.broadcast %cst_63 : f32 to vector<4x16xf32>
    %148 = arith.subf %147, %140 : vector<4x16xf32>
    %149 = arith.mulf %148, %146 : vector<4x16xf32>
    %c152 = arith.constant 152 : index
    %c0_64 = arith.constant 0 : index
    %150 = vector.load %arg2[%c152, %c0_64] : memref<344x128xf32, #tpu.memory_space<vmem>>, vector<16x48xf32>
    %cst_65 = arith.constant dense<0.000000e+00> : vector<4x48xf32>
    %151 = tpu.matmul %149, %150, %cst_65 {dimension_numbers = #tpu.dot_dimension_numbers<[1], [0], [0], [1], [0, 0, 1, 1], [], []>} : vector<4x16xf32>, vector<16x48xf32>, vector<4x48xf32> -> vector<4x48xf32>
    %c14 = arith.constant 14 : index
    %c0_66 = arith.constant 0 : index
    %152 = vector.load %arg3[%c14, %c0_66] : memref<24x128xf32, #tpu.memory_space<vmem>>, vector<1x48xf32>
    %153 = vector.broadcast %152 : vector<1x48xf32> to vector<4x48xf32>
    %154 = arith.addf %151, %153 : vector<4x48xf32>
    %155 = vector.extract_strided_slice %154 {offsets = [0, 0], sizes = [4, 16], strides = [1, 1]} : vector<4x48xf32> to vector<4x16xf32>
    %156 = arith.negf %155 : vector<4x16xf32>
    %157 = math.exp %156 : vector<4x16xf32>
    %cst_67 = arith.constant 1.000000e+00 : f32
    %158 = vector.broadcast %cst_67 : f32 to vector<4x16xf32>
    %159 = arith.addf %158, %157 : vector<4x16xf32>
    %160 = arith.divf %158, %159 : vector<4x16xf32>
    %161 = vector.extract_strided_slice %154 {offsets = [0, 16], sizes = [4, 16], strides = [1, 1]} : vector<4x48xf32> to vector<4x16xf32>
    %162 = arith.negf %161 : vector<4x16xf32>
    %163 = math.exp %162 : vector<4x16xf32>
    %cst_68 = arith.constant 1.000000e+00 : f32
    %164 = vector.broadcast %cst_68 : f32 to vector<4x16xf32>
    %165 = arith.addf %164, %163 : vector<4x16xf32>
    %166 = arith.divf %164, %165 : vector<4x16xf32>
    %167 = vector.extract_strided_slice %154 {offsets = [0, 32], sizes = [4, 16], strides = [1, 1]} : vector<4x48xf32> to vector<4x16xf32>
    %c15 = arith.constant 15 : index
    %c0_69 = arith.constant 0 : index
    %168 = vector.load %arg3[%c15, %c0_69] : memref<24x128xf32, #tpu.memory_space<vmem>>, vector<1x16xf32>
    %169 = vector.broadcast %168 : vector<1x16xf32> to vector<4x16xf32>
    %170 = arith.mulf %160, %169 : vector<4x16xf32>
    %171 = arith.addf %167, %170 : vector<4x16xf32>
    %172 = math.tanh %171 : vector<4x16xf32>
    %cst_70 = arith.constant 1.000000e+00 : f32
    %173 = vector.broadcast %cst_70 : f32 to vector<4x16xf32>
    %174 = arith.subf %173, %166 : vector<4x16xf32>
    %175 = arith.mulf %174, %172 : vector<4x16xf32>
    %c168 = arith.constant 168 : index
    %c0_71 = arith.constant 0 : index
    %176 = vector.load %arg2[%c168, %c0_71] : memref<344x128xf32, #tpu.memory_space<vmem>>, vector<16x48xf32>
    %cst_72 = arith.constant dense<0.000000e+00> : vector<4x48xf32>
    %177 = tpu.matmul %175, %176, %cst_72 {dimension_numbers = #tpu.dot_dimension_numbers<[1], [0], [0], [1], [0, 0, 1, 1], [], []>} : vector<4x16xf32>, vector<16x48xf32>, vector<4x48xf32> -> vector<4x48xf32>
    %c16 = arith.constant 16 : index
    %c0_73 = arith.constant 0 : index
    %178 = vector.load %arg3[%c16, %c0_73] : memref<24x128xf32, #tpu.memory_space<vmem>>, vector<1x48xf32>
    %179 = vector.broadcast %178 : vector<1x48xf32> to vector<4x48xf32>
    %180 = arith.addf %177, %179 : vector<4x48xf32>
    %181 = vector.extract_strided_slice %180 {offsets = [0, 0], sizes = [4, 16], strides = [1, 1]} : vector<4x48xf32> to vector<4x16xf32>
    %182 = arith.negf %181 : vector<4x16xf32>
    %183 = math.exp %182 : vector<4x16xf32>
    %cst_74 = arith.constant 1.000000e+00 : f32
    %184 = vector.broadcast %cst_74 : f32 to vector<4x16xf32>
    %185 = arith.addf %184, %183 : vector<4x16xf32>
    %186 = arith.divf %184, %185 : vector<4x16xf32>
    %187 = vector.extract_strided_slice %180 {offsets = [0, 16], sizes = [4, 16], strides = [1, 1]} : vector<4x48xf32> to vector<4x16xf32>
    %188 = arith.negf %187 : vector<4x16xf32>
    %189 = math.exp %188 : vector<4x16xf32>
    %cst_75 = arith.constant 1.000000e+00 : f32
    %190 = vector.broadcast %cst_75 : f32 to vector<4x16xf32>
    %191 = arith.addf %190, %189 : vector<4x16xf32>
    %192 = arith.divf %190, %191 : vector<4x16xf32>
    %193 = vector.extract_strided_slice %180 {offsets = [0, 32], sizes = [4, 16], strides = [1, 1]} : vector<4x48xf32> to vector<4x16xf32>
    %c17 = arith.constant 17 : index
    %c0_76 = arith.constant 0 : index
    %194 = vector.load %arg3[%c17, %c0_76] : memref<24x128xf32, #tpu.memory_space<vmem>>, vector<1x16xf32>
    %195 = vector.broadcast %194 : vector<1x16xf32> to vector<4x16xf32>
    %196 = arith.mulf %186, %195 : vector<4x16xf32>
    %197 = arith.addf %193, %196 : vector<4x16xf32>
    %198 = math.tanh %197 : vector<4x16xf32>
    %cst_77 = arith.constant 1.000000e+00 : f32
    %199 = vector.broadcast %cst_77 : f32 to vector<4x16xf32>
    %200 = arith.subf %199, %192 : vector<4x16xf32>
    %201 = arith.mulf %200, %198 : vector<4x16xf32>
    %c184 = arith.constant 184 : index
    %c0_78 = arith.constant 0 : index
    %202 = vector.load %arg2[%c184, %c0_78] : memref<344x128xf32, #tpu.memory_space<vmem>>, vector<16x48xf32>
    %cst_79 = arith.constant dense<0.000000e+00> : vector<4x48xf32>
    %203 = tpu.matmul %201, %202, %cst_79 {dimension_numbers = #tpu.dot_dimension_numbers<[1], [0], [0], [1], [0, 0, 1, 1], [], []>} : vector<4x16xf32>, vector<16x48xf32>, vector<4x48xf32> -> vector<4x48xf32>
    %c18 = arith.constant 18 : index
    %c0_80 = arith.constant 0 : index
    %204 = vector.load %arg3[%c18, %c0_80] : memref<24x128xf32, #tpu.memory_space<vmem>>, vector<1x48xf32>
    %205 = vector.broadcast %204 : vector<1x48xf32> to vector<4x48xf32>
    %206 = arith.addf %203, %205 : vector<4x48xf32>
    %207 = vector.extract_strided_slice %206 {offsets = [0, 0], sizes = [4, 16], strides = [1, 1]} : vector<4x48xf32> to vector<4x16xf32>
    %208 = arith.negf %207 : vector<4x16xf32>
    %209 = math.exp %208 : vector<4x16xf32>
    %cst_81 = arith.constant 1.000000e+00 : f32
    %210 = vector.broadcast %cst_81 : f32 to vector<4x16xf32>
    %211 = arith.addf %210, %209 : vector<4x16xf32>
    %212 = arith.divf %210, %211 : vector<4x16xf32>
    %213 = vector.extract_strided_slice %206 {offsets = [0, 16], sizes = [4, 16], strides = [1, 1]} : vector<4x48xf32> to vector<4x16xf32>
    %214 = arith.negf %213 : vector<4x16xf32>
    %215 = math.exp %214 : vector<4x16xf32>
    %cst_82 = arith.constant 1.000000e+00 : f32
    %216 = vector.broadcast %cst_82 : f32 to vector<4x16xf32>
    %217 = arith.addf %216, %215 : vector<4x16xf32>
    %218 = arith.divf %216, %217 : vector<4x16xf32>
    %219 = vector.extract_strided_slice %206 {offsets = [0, 32], sizes = [4, 16], strides = [1, 1]} : vector<4x48xf32> to vector<4x16xf32>
    %c19 = arith.constant 19 : index
    %c0_83 = arith.constant 0 : index
    %220 = vector.load %arg3[%c19, %c0_83] : memref<24x128xf32, #tpu.memory_space<vmem>>, vector<1x16xf32>
    %221 = vector.broadcast %220 : vector<1x16xf32> to vector<4x16xf32>
    %222 = arith.mulf %212, %221 : vector<4x16xf32>
    %223 = arith.addf %219, %222 : vector<4x16xf32>
    %224 = math.tanh %223 : vector<4x16xf32>
    %cst_84 = arith.constant 1.000000e+00 : f32
    %225 = vector.broadcast %cst_84 : f32 to vector<4x16xf32>
    %226 = arith.subf %225, %218 : vector<4x16xf32>
    %227 = arith.mulf %226, %224 : vector<4x16xf32>
    %c200 = arith.constant 200 : index
    %c0_85 = arith.constant 0 : index
    %228 = vector.load %arg2[%c200, %c0_85] : memref<344x128xf32, #tpu.memory_space<vmem>>, vector<16x32xf32>
    %cst_86 = arith.constant dense<0.000000e+00> : vector<4x32xf32>
    %229 = tpu.matmul %227, %228, %cst_86 {dimension_numbers = #tpu.dot_dimension_numbers<[1], [0], [0], [1], [0, 0, 1, 1], [], []>} : vector<4x16xf32>, vector<16x32xf32>, vector<4x32xf32> -> vector<4x32xf32>
    %c20 = arith.constant 20 : index
    %c0_87 = arith.constant 0 : index
    %230 = vector.load %arg3[%c20, %c0_87] : memref<24x128xf32, #tpu.memory_space<vmem>>, vector<1x32xf32>
    %231 = vector.broadcast %230 : vector<1x32xf32> to vector<4x32xf32>
    %232 = arith.addf %229, %231 : vector<4x32xf32>
    %cst_88 = arith.constant 0.000000e+00 : f32
    %233 = vector.broadcast %cst_88 : f32 to vector<4x32xf32>
    %234 = arith.maximumf %232, %233 : vector<4x32xf32>
    %c216 = arith.constant 216 : index
    %c0_89 = arith.constant 0 : index
    %235 = vector.load %arg2[%c216, %c0_89] : memref<344x128xf32, #tpu.memory_space<vmem>>, vector<32x32xf32>
    %cst_90 = arith.constant dense<0.000000e+00> : vector<4x32xf32>
    %236 = tpu.matmul %234, %235, %cst_90 {dimension_numbers = #tpu.dot_dimension_numbers<[1], [0], [0], [1], [0, 0, 1, 1], [], []>} : vector<4x32xf32>, vector<32x32xf32>, vector<4x32xf32> -> vector<4x32xf32>
    %c21 = arith.constant 21 : index
    %c0_91 = arith.constant 0 : index
    %237 = vector.load %arg3[%c21, %c0_91] : memref<24x128xf32, #tpu.memory_space<vmem>>, vector<1x32xf32>
    %238 = vector.broadcast %237 : vector<1x32xf32> to vector<4x32xf32>
    %239 = arith.addf %236, %238 : vector<4x32xf32>
    %cst_92 = arith.constant 0.000000e+00 : f32
    %240 = vector.broadcast %cst_92 : f32 to vector<4x32xf32>
    %241 = arith.maximumf %239, %240 : vector<4x32xf32>
    %c248 = arith.constant 248 : index
    %c0_93 = arith.constant 0 : index
    %242 = vector.load %arg2[%c248, %c0_93] : memref<344x128xf32, #tpu.memory_space<vmem>>, vector<32x64xf32>
    %cst_94 = arith.constant dense<0.000000e+00> : vector<4x64xf32>
    %243 = tpu.matmul %241, %242, %cst_94 {dimension_numbers = #tpu.dot_dimension_numbers<[1], [0], [0], [1], [0, 0, 1, 1], [], []>} : vector<4x32xf32>, vector<32x64xf32>, vector<4x64xf32> -> vector<4x64xf32>
    %c22 = arith.constant 22 : index
    %c0_95 = arith.constant 0 : index
    %244 = vector.load %arg3[%c22, %c0_95] : memref<24x128xf32, #tpu.memory_space<vmem>>, vector<1x64xf32>
    %245 = vector.broadcast %244 : vector<1x64xf32> to vector<4x64xf32>
    %246 = arith.addf %243, %245 : vector<4x64xf32>
    %cst_96 = arith.constant 0.000000e+00 : f32
    %247 = vector.broadcast %cst_96 : f32 to vector<4x64xf32>
    %248 = arith.maximumf %246, %247 : vector<4x64xf32>
    %c280 = arith.constant 280 : index
    %c0_97 = arith.constant 0 : index
    %249 = vector.load %arg2[%c280, %c0_97] : memref<344x128xf32, #tpu.memory_space<vmem>>, vector<64x128xf32>
    %cst_98 = arith.constant dense<0.000000e+00> : vector<4x128xf32>
    %250 = tpu.matmul %248, %249, %cst_98 {dimension_numbers = #tpu.dot_dimension_numbers<[1], [0], [0], [1], [0, 0, 1, 1], [], []>} : vector<4x64xf32>, vector<64x128xf32>, vector<4x128xf32> -> vector<4x128xf32>
    %c23 = arith.constant 23 : index
    %c0_99 = arith.constant 0 : index
    %251 = vector.load %arg3[%c23, %c0_99] : memref<24x128xf32, #tpu.memory_space<vmem>>, vector<1x128xf32>
    %252 = vector.broadcast %251 : vector<1x128xf32> to vector<4x128xf32>
    %253 = arith.addf %250, %252 : vector<4x128xf32>
    %c0_100 = arith.constant 0 : index
    %c0_101 = arith.constant 0 : index
    %254 = vector.load %arg4[%c0_100, %c0_101] : memref<4x128xf32, #tpu.memory_space<vmem>>, vector<4x128xf32>
    tpu.vector_store %arg4[%c0_100, %c0_101], %253 {strides = array<i32>} : memref<4x128xf32, #tpu.memory_space<vmem>>, vector<4x128xf32>,
    return
  }
}

</mosaic_0001>

<bundles_post_ra>
// kernel: tpu_custom_call.1
= control target key start
LH: loop header
LB: loop body
LE: loop exit
PB: predicated region body
PF: predicated region fallthrough
CT: control target
= control target key end

     0   :  { %9 = vsyncpa [#allocation3], 0  ;;  %s2649_s0 = inlined_call_operand.vmem [shape: f32[32,32], index: 0, kind: input, shape index: {}]   ;;  %s2650_s1 = inlined_call_operand.vmem [shape: f32[32,4], index: 1, kind: input, shape index: {}]   ;;  %s2651_s2 = inlined_call_operand.hbm [shape: f32[344,128], index: 2, kind: input, shape index: {}]   ;;  %s2652_s3 = inlined_call_operand.hbm [shape: f32[24,128], index: 3, kind: input, shape index: {}]   ;;  %s2653_s4 = inlined_call_operand.hbm [shape: f32[4,128], index: 4, kind: output, shape index: {}]  }
   0x1   :  { %10 = vsyncpa [#allocation6], 0 }
   0x2   :  { %11 = vsyncpa [#allocation4], 0  ;;  %s2428_s15 = smov [#allocation2]  }
   0x3   :  { %s21_s16 = sshll.u32 %s2428_s15, 4  ;;  %s22_s16 = int_to_ptr.vmem [resolvable:$true] %s21_s16 }
   0x4   :  { %s2370_s17 = scalar_lea.vmem %s22_s16, 5504  ;;  %p2375_p1 = scmp.lt.s32.totalorder %s22_s16, %s22_s16 }
   0x5   :  { %p2371_p0 = scmp.ne.s32.totalorder %s22_s16, %s2370_s17  ;;  %p2376_p2 = scmp.lt.s32.totalorder %s2370_s17, %s2370_s17 }
   0x7   :  { %p2377_p3 = por %p2376_p2, %p2375_p1 }
   0x9   :  { %p2378_p4 = pnand %p2377_p3, %p2371_p0 }
   0xb   :  { %2381 = shalt.err (!%p2378_p4)
}
   0xc   :  { %s2429_s18 = smov 128   ;;  %s2430_s19 = smov 8  }
   0xd   :  { %27 = dma.hbm_to_vmem [thread:$0]  %s2651_s2, 5504, %s22_s16, [#allocation3], %s2429_s18, %s2429_s18, %s2430_s19  }
   0xe   :  { %s2431_s22 = smov [#allocation5]  }
   0xf   :  { %s33_s23 = sshll.u32 %s2431_s22, 4  ;;  %s34_s23 = int_to_ptr.vmem [resolvable:$true] %s33_s23 }
  0x10   :  { %s2390_s24 = scalar_lea.vmem %s34_s23, 384  ;;  %p2395_p6 = scmp.lt.s32.totalorder %s34_s23, %s34_s23 }
  0x11   :  { %p2391_p5 = scmp.ne.s32.totalorder %s34_s23, %s2390_s24  ;;  %p2396_p7 = scmp.lt.s32.totalorder %s2390_s24, %s2390_s24 }
  0x13   :  { %p2397_p8 = por %p2396_p7, %p2395_p6 }
  0x15   :  { %p2398_p9 = pnand %p2397_p8, %p2391_p5 }
  0x17   :  { %2401 = shalt.err (!%p2398_p9)
}
  0x18   :  { %39 = dma.hbm_to_vmem [thread:$0]  %s2652_s3, 384, %s34_s23, [#allocation6], %s2429_s18, %s2429_s18, %s2430_s19  }
  0x19   :  { %2422 = dma.done.wait [#allocation3], 5504  }
  0x1a   :  { %2423 = vsyncadd [#allocation3], 4294961792 }
  0x1b   :  { %2424 = dma.done.wait [#allocation6], 384  }
  0x1c   :  { %2425 = vsyncadd [#allocation6], 4294966912  ;;  %vm63_vm0 = vcmask 261120   ;;  %v53_v0 = vld [vmem:[%s2650_s1 + $0x18] sm:$0xff]  ;;  %v52_v1 = vld [vmem:[%s2650_s1 + $0x10] sm:$0xff]  ;;  %vm178_vm1 = vcmask 1043456  }
  0x1d   :  { %2135 = vmatprep.subr.mxu0 %v53_v0  ;;  %v2477_v2 = vld [vmem:[%s2649_s0] sm:$0xff]  ;;  %v51_v3 = vld [vmem:[%s2650_s1 + $0x8] sm:$0xff]  ;;  %v2495_v6 = vld [vmem:[%s2649_s0 + $0x10] sm:$0xff]  ;;  %vm165_vm2 = vcmask 31744   ;;  %vm999_vm3 = vcmask 64512   ;;  %vm2433_vm4 = vmmov 0  }
  0x1e   :  { %2136 = vmatpush3.msra.mxu0 %v53_v0  ;;  %2143 = vmatprep.mubr.msk.f32.mxu0 %vm63_vm0, %v2477_v2  ;;  %v50_v4 = vld [vmem:[%s2650_s1] sm:$0xff]  ;;  %v2490_v5 = vld [vmem:[%s2649_s0 + $0x8] sm:$0xff]  ;;  %v2504_v7 = vld [vmem:[%s2649_s0 + $0x18] sm:$0xff]  ;;  %vm1195_vm5 = vcmask 1041409   ;;  %vm1197_vm6 = vcmask 1042434   ;;  %vm1199_vm7 = vcmask 1043459  }
  0x1f   :  { %2137 = vmatprep.subr.mxu0 %v52_v1  ;;  %v54_v8 = vld [vmem:[#allocation2] sm:$0xf]  ;;  %v58_v14 = vld [vmem:[#allocation2 + $0x18] sm:$0xff]  ;;  %v57_v15 = vld [vmem:[#allocation2 + $0x10] sm:$0xff]  ;;  %s2434_s0 = smov 32   ;;  %s2435_s14 = smov 112  }
  0x20   :  { %2138 = vmatpush3.msra.mxu0 %v52_v1  ;;  %2149 = vmatprep.subr.msk.mxu1 %vm178_vm1, %v54_v8  ;;  %v59_v13 = vld [vmem:[#allocation2 + $0x20] sm:$0xff]  ;;  %v56_v16 = vld [vmem:[#allocation2 + $0x8] sm:$0xff]  ;;  %v1973_v17 = vld [vmem:[#allocation5] ss:$0 sm:$0xff]  ;;  %vm1307_vm8 = vcmask 130048   ;;  %vm1878_vm9 = vcmask 523264  }
  0x21   :  { %2139 = vmatprep.subr.mxu0 %v51_v3  ;;  %2150 = vmatpush3.msk.msra.mxu1 %vm178_vm1, %v54_v8  ;;  %v436_v30 = vld [vmem:[#allocation2 + $0x40] sm:$0xff]  ;;  %v435_v31 = vld [vmem:[#allocation2 + $0x38] sm:$0xff]  ;;  %s2436_s15 = smov [#allocation7]  }
  0x22   :  { %2140 = vmatpush3.msra.mxu0 %v51_v3  ;;  %2185 = vmatprep.subr.mxu1 %v436_v30  ;;  %v1979_v32 = vld [vmem:[#allocation5 + $0x1] ss:$0 sm:$0xff]  ;;  %s1959_s16 = sshll.u32 %s2436_s15, 4  ;;  %s1960_s16 = int_to_ptr.vmem [resolvable:$true] %s1959_s16 }
  0x23   :  { %2141 = vmatprep.subr.mxu0 %v50_v4  ;;  %s2402_s17 = scalar_lea.vmem %s1960_s16, 64  ;;  %p2407_p11 = scmp.lt.s32.totalorder %s1960_s16, %s1960_s16 }
  0x24   :  { %2142 = vmatpush3.msra.mxu0 %v50_v4  ;;  %p2403_p10 = scmp.ne.s32.totalorder %s1960_s16, %s2402_s17  ;;  %p2408_p12 = scmp.lt.s32.totalorder %s2402_s17, %s2402_s17 }
  0x25   :  { %2144 = vmatmul.mubr.msk.f32.vlgmr.msra.gmra.mxu0 %vm63_vm0, %v2490_v5  ;;  %2157 = vmatprep.subr.mxu0 %v59_v13 }
  0x26   :  { %2146 = vmatprep.mubr.msk.f32.mxu0 %vm63_vm0, %v2495_v6  ;;  %2158 = vmatpush3.msra.mxu0 %v59_v13  ;;  %p2409_p13 = por %p2408_p12, %p2407_p11 }
  0x27   :  { %2159 = vmatprep.subr.mxu0 %v58_v14 }
  0x28   :  { %2160 = vmatpush3.msra.mxu0 %v58_v14  ;;  %p2410_p0 = pnand %p2409_p13, %p2403_p10 }
  0x29   :  { %2147 = vmatmul.mubr.msk.f32.gmra.mxu0 %vm63_vm0, %v2504_v7  ;;  %2161 = vmatprep.subr.mxu0 %v57_v15 }
  0x2a   :  { %2162 = vmatpush3.msra.mxu0 %v57_v15 }
  0x2b   :  { %2163 = vmatprep.subr.mxu0 %v56_v16 }
  0x2c   :  { %2164 = vmatpush3.msra.mxu0 %v56_v16 }
  0xe5   :  { %v2145_v9 = vpop.f32.mrf.mxu0 }
  0xe7   :  { %v142_v10 = vpop.f32.mrf.mxu0 }
  0xe8   :  { %2151 = vmatprep.mubr.msk.f32.mxu1 %vm165_vm2, %v142_v10 }
  0xe9   :  { %v2148_v11 = vpop.f32.mrf.mxu0  ;;  %2152 = vmatmul.mubr.msk.f32.vlgmr.msra.gmra.mxu1 %vm165_vm2, %v2145_v9 }
  0xea   :  { %2186 = vmatpush3.msra.mxu1 %v436_v30 }
  0xeb   :  { %v152_v12 = vpop.f32.mrf.mxu0  ;;  %2187 = vmatprep.subr.mxu1 %v435_v31 }
  0xec   :  { %2154 = vmatprep.mubr.msk.f32.mxu1 %vm165_vm2, %v152_v12  ;;  %2188 = vmatpush3.msra.mxu1 %v435_v31 }
  0xed   :  { %2155 = vmatmul.mubr.msk.f32.gmra.mxu1 %vm165_vm2, %v2148_v11 }
 0x1a9   :  { %v2153_v18 = vpop.f32.mrf.mxu1 }
 0x1aa   :  { %v254_v19 = vadd.f32 %v2153_v18, %v1973_v17 }
 0x1ab   :  { %v248_v20 = vpop.f32.mrf.mxu1 }
 0x1ac   :  { %v249_v21 = vadd.f32 %v1973_v17, %v248_v20  ;;  %v268_v24 = vmax.f32 %v254_v19, 0.0 }
 0x1ad   :  { %v2156_v22 = vpop.f32.mrf.mxu1 }
 0x1ae   :  { %v267_v23 = vmax.f32 %v249_v21, 0.0  ;;  %v264_v25 = vadd.f32 %v2156_v22, %v1973_v17  ;;  %v417_v21 = vlaneseq }
 0x1af   :  { %v258_v26 = vpop.f32.mrf.mxu1 }
 0x1b0   :  { %v259_v27 = vadd.f32 %v1973_v17, %v258_v26  ;;  %2165 = vmatprep.mubr.msk.f32.mxu0 %vm63_vm0, %v267_v23  ;;  %v270_v29 = vmax.f32 %v264_v25, 0.0  ;;  %v418_v22 = vshrl.u32 %v417_v21, 7  ;;  %v61_v23 = vld [vmem:[#allocation5 + $0x2] sm:$0x1] }
 0x1b1   :  { %2166 = vmatmul.mubr.msk.f32.vlgmr.msra.gmra.mxu0 %vm63_vm0, %v268_v24 }
 0x1b2   :  { %v269_v28 = vmax.f32 %v259_v27, 0.0  ;;  %v2527_v24 = vsub.s32 0, %v418_v22  ;;  %v62_v27 = vld [vmem:[#allocation5 + $0x3] sm:$0x1] }
 0x1b4   :  { %2168 = vmatprep.mubr.msk.f32.mxu0 %vm63_vm0, %v269_v28 }
 0x1b5   :  { %2169 = vmatmul.mubr.msk.f32.gmra.mxu0 %vm63_vm0, %v270_v29 }
 0x1b6   :  { %2179 = vmatprep.mubr.msk.f32.mxu0 %vm63_vm0, %v2477_v2 }
 0x271   :  { %v2167_v33 = vpop.f32.mrf.mxu0 }
 0x272   :  { %v359_v34 = vadd.f32 %v2167_v33, %v1979_v32 }
 0x273   :  { %v353_v35 = vpop.f32.mrf.mxu0 }
 0x274   :  { %v354_v36 = vadd.f32 %v1979_v32, %v353_v35  ;;  %v373_v37 = vmax.f32 %v359_v34, 0.0 }
 0x275   :  { %v2170_v38 = vpop.f32.mrf.mxu0 }
 0x276   :  { %v2514_v39 = vmax.f32 %v354_v36, 0.0  ;;  %v369_v40 = vadd.f32 %v2170_v38, %v1979_v32  ;;  %v392_v43 = vmul.f32 %v373_v37, %v373_v37  ;;  %v377_v47 = vsel %vm63_vm0, %v373_v37, 0.0 }
 0x277   :  { %v363_v41 = vpop.f32.mrf.mxu0 }
 0x278   :  { %v391_v42 = vmul.f32 %v2514_v39, %v2514_v39  ;;  %v376_v44 = vsel %vm63_vm0, %v2514_v39, 0.0  ;;  %v375_v45 = vmax.f32 %v369_v40, 0.0  ;;  %v364_v46 = vadd.f32 %v1979_v32, %v363_v41 }
 0x279   :  { %v378_v50 = vadd.f32 %v377_v47, %v376_v44  ;;  %v396_v51 = vsel %vm63_vm0, %v392_v43, 0.0  ;;  %v440_v47 = vld [vmem:[#allocation2 + $0x58] sm:$0xff] }
 0x27a   :  { %v395_v48 = vsel %vm63_vm0, %v391_v42, 0.0  ;;  %v374_v49 = vmax.f32 %v364_v46, 0.0  ;;  %v394_v52 = vmul.f32 %v375_v45, %v375_v45  ;;  %v381_v57 = vsel %vm63_vm0, %v375_v45, 0.0  ;;  %v433_v42 = vld [vmem:[#allocation2 + $0x28] sm:$0xff]  ;;  %v441_v46 = vld [vmem:[#allocation2 + $0x60] sm:$0xff] }
 0x27b   :  { %v397_v55 = vadd.f32 %v396_v51, %v395_v48  ;;  %v439_v48 = vld [vmem:[#allocation2 + $0x50] sm:$0xff] }
 0x27c   :  { %v379_v53 = vsel %vm63_vm0, %v374_v49, 0.0  ;;  %v393_v54 = vmul.f32 %v374_v49, %v374_v49  ;;  %v400_v61 = vsel %vm63_vm0, %v394_v52, 0.0 }
 0x27d   :  { %v380_v56 = vadd.f32 %v379_v53, %v378_v50  ;;  %v1988_v50 = vld [vmem:[#allocation5 + $0x4] ss:$0 sm:$0xff] }
 0x27e   :  { %v398_v58 = vsel %vm63_vm0, %v393_v54, 0.0 }
 0x27f   :  { %v382_v59 = vadd.f32 %v381_v57, %v380_v56  ;;  %v399_v60 = vadd.f32 %v398_v58, %v397_v55 }
 0x281   :  { %v383_v62 = vrot.slane %v382_v59, 4  ;;  %v401_v63 = vadd.f32 %v400_v61, %v399_v60 }
 0x283   :  { %v384_v0 = vadd.f32 %v383_v62, %v382_v59  ;;  %v402_v1 = vrot.slane %v401_v63, 4 }
 0x285   :  { %v385_v3 = vrot.slane %v384_v0, 2  ;;  %v403_v4 = vadd.f32 %v402_v1, %v401_v63  ;;  %v799_v63 = vld [vmem:[#allocation2 + $0x80] sm:$0xff]  ;;  %v797_v1 = vld [vmem:[#allocation2 + $0x70] sm:$0xff] }
 0x287   :  { %v386_v8 = vadd.f32 %v385_v3, %v384_v0  ;;  %v404_v9 = vrot.slane %v403_v4, 2  ;;  %v798_v0 = vld [vmem:[#allocation2 + $0x78] sm:$0xff]  ;;  %v796_v3 = vld [vmem:[#allocation2 + $0x68] sm:$0xff] }
 0x289   :  { %v387_v10 = vrot.slane %v386_v8, 1  ;;  %v405_v11 = vadd.f32 %v404_v9, %v403_v4  ;;  %v1993_v4 = vld [vmem:[#allocation5 + $0x5] ss:$0 sm:$0xff] }
 0x28b   :  { %v388_v12 = vadd.f32 %v387_v10, %v386_v8  ;;  %v406_v13 = vrot.slane %v405_v11, 1 }
 0x28d   :  { %v390_v14 = vmul.f32 0.03125, %v388_v12  ;;  %v407_v15 = vadd.f32 %v406_v13, %v405_v11 }
 0x28f   :  { %v408_v16 = vmul.f32 0.03125, %v407_v15  ;;  %v409_v17 = vmul.f32 %v390_v14, %v390_v14 }
 0x291   :  { %v410_v18 = vsub.f32 %v408_v16, %v409_v17 }
 0x293   :  { %v411_v19 = vmax.f32 %v410_v18, 0.0 }
 0x295   :  { %v412_v20 = vadd.f32 1e-05, %v411_v19 }
 0x297   :  { %2332 = vrsqrt.f32 %v412_v20 }
 0x2a4   :  { %v2333_v25 = vpop.eup %2332 }
 0x2a5   :  { %v414_v26 = vmul.f32 %v2333_v25, %v61_v23 }
 0x2a7   :  { %v420_v28 = vrot.slane %v414_v26, %v2527_v24  ;;  %v415_v29 = vmul.f32 %v414_v26, %v390_v14 }
 0x2a9   :  { %v416_v30 = vsub.f32 %v62_v27, %v415_v29  ;;  %v424_v31 = vmul.f32 %v420_v28, %v375_v45  ;;  %v423_v33 = vmul.f32 %v420_v28, %v374_v49  ;;  %v422_v36 = vmul.f32 %v420_v28, %v373_v37  ;;  %v434_v37 = vld [vmem:[#allocation2 + $0x30] sm:$0xff]  ;;  %v438_v49 = vld [vmem:[#allocation2 + $0x48] sm:$0xff] }
 0x2aa   :  { %v421_v40 = vmul.f32 %v420_v28, %v2514_v39  ;;  %2189 = vmatprep.subr.mxu1 %v434_v37 }
 0x2ab   :  { %v428_v32 = vrot.slane %v416_v30, %v2527_v24  ;;  %2190 = vmatpush3.msra.mxu1 %v434_v37 }
 0x2ac   :  { %2191 = vmatprep.subr.mxu1 %v433_v42 }
 0x2ad   :  { %v432_v34 = vadd.f32 %v428_v32, %v424_v31  ;;  %v431_v35 = vadd.f32 %v428_v32, %v423_v33  ;;  %v430_v38 = vadd.f32 %v428_v32, %v422_v36  ;;  %v429_v41 = vadd.f32 %v428_v32, %v421_v40  ;;  %2192 = vmatpush3.msra.mxu1 %v433_v42 }
 0x2ae   :  { %2213 = vmatprep.subr.mxu1 %v799_v63 }
 0x2af   :  { %2171 = vmatprep.subr.mxu0 %v432_v34 }
 0x2b0   :  { %2172 = vmatpush3.msra.mxu0 %v432_v34 }
 0x2b1   :  { %2173 = vmatprep.subr.mxu0 %v431_v35 }
 0x2b2   :  { %2174 = vmatpush3.msra.mxu0 %v431_v35 }
 0x2b3   :  { %2175 = vmatprep.subr.mxu0 %v430_v38 }
 0x2b4   :  { %2176 = vmatpush3.msra.mxu0 %v430_v38 }
 0x2b5   :  { %2177 = vmatprep.subr.mxu0 %v429_v41 }
 0x2b6   :  { %2178 = vmatpush3.msra.mxu0 %v429_v41 }
 0x2b7   :  { %2180 = vmatmul.mubr.msk.f32.vlgmr.msra.gmra.mxu0 %vm63_vm0, %v2490_v5  ;;  %2199 = vmatprep.subr.mxu0 %v441_v46 }
 0x2b8   :  { %2182 = vmatprep.mubr.msk.f32.mxu0 %vm63_vm0, %v2495_v6  ;;  %2200 = vmatpush3.msra.mxu0 %v441_v46 }
 0x2b9   :  { %2201 = vmatprep.subr.mxu0 %v440_v47 }
 0x2ba   :  { %2202 = vmatpush3.msra.mxu0 %v440_v47 }
 0x2bb   :  { %2183 = vmatmul.mubr.msk.f32.gmra.mxu0 %vm63_vm0, %v2504_v7  ;;  %2203 = vmatprep.subr.mxu0 %v439_v48 }
 0x2bc   :  { %2204 = vmatpush3.msra.mxu0 %v439_v48 }
 0x2bd   :  { %2205 = vmatprep.subr.mxu0 %v438_v49 }
 0x2be   :  { %2206 = vmatpush3.msra.mxu0 %v438_v49 }
 0x377   :  { %v2181_v39 = vpop.f32.mrf.mxu0 }
 0x379   :  { %v511_v43 = vpop.f32.mrf.mxu0 }
 0x37a   :  { %2193 = vmatprep.mubr.msk.f32.mxu1 %vm63_vm0, %v511_v43 }
 0x37b   :  { %v2184_v44 = vpop.f32.mrf.mxu0  ;;  %2194 = vmatmul.mubr.msk.f32.vlgmr.msra.gmra.mxu1 %vm63_vm0, %v2181_v39 }
 0x37c   :  { %2214 = vmatpush3.msra.mxu1 %v799_v63 }
 0x37d   :  { %v521_v45 = vpop.f32.mrf.mxu0  ;;  %2215 = vmatprep.subr.mxu1 %v798_v0 }
 0x37e   :  { %2196 = vmatprep.mubr.msk.f32.mxu1 %vm63_vm0, %v521_v45  ;;  %2216 = vmatpush3.msra.mxu1 %v798_v0 }
 0x37f   :  { %2197 = vmatmul.mubr.msk.f32.gmra.mxu1 %vm63_vm0, %v2184_v44  ;;  %2217 = vmatprep.subr.mxu1 %v797_v1 }
 0x380   :  { %2218 = vmatpush3.msra.mxu1 %v797_v1 }
 0x381   :  { %2219 = vmatprep.subr.mxu1 %v796_v3 }
 0x382   :  { %2220 = vmatpush3.msra.mxu1 %v796_v3 }
 0x43b   :  { %v2195_v51 = vpop.f32.mrf.mxu1 }
 0x43c   :  { %v618_v52 = vadd.f32 %v2195_v51, %v1988_v50 }
 0x43d   :  { %v612_v53 = vpop.f32.mrf.mxu1 }
 0x43e   :  { %v613_v54 = vadd.f32 %v1988_v50, %v612_v53  ;;  %v632_v57 = vmax.f32 %v618_v52, 0.0 }
 0x43f   :  { %v2198_v55 = vpop.f32.mrf.mxu1 }
 0x440   :  { %v631_v56 = vmax.f32 %v613_v54, 0.0  ;;  %v628_v58 = vadd.f32 %v2198_v55, %v1988_v50 }
 0x441   :  { %v622_v59 = vpop.f32.mrf.mxu1 }
 0x442   :  { %v623_v60 = vadd.f32 %v1988_v50, %v622_v59  ;;  %2207 = vmatprep.mubr.msk.f32.mxu0 %vm63_vm0, %v631_v56  ;;  %v634_v62 = vmax.f32 %v628_v58, 0.0  ;;  %v443_v56 = vld [vmem:[#allocation5 + $0x6] sm:$0x1]  ;;  %v444_v59 = vld [vmem:[#allocation5 + $0x7] sm:$0x1] }
 0x443   :  { %2208 = vmatmul.mubr.msk.f32.vlgmr.msra.gmra.mxu0 %vm63_vm0, %v632_v57 }
 0x444   :  { %v633_v61 = vmax.f32 %v623_v60, 0.0 }
 0x446   :  { %2210 = vmatprep.mubr.msk.f32.mxu0 %vm63_vm0, %v633_v61 }
 0x447   :  { %2211 = vmatmul.mubr.msk.f32.gmra.mxu0 %vm63_vm0, %v634_v62 }
 0x448   :  { %2235 = vmatprep.mubr.msk.f32.mxu0 %vm63_vm0, %v2477_v2 }
 0x503   :  { %v2209_v8 = vpop.f32.mrf.mxu0 }
 0x504   :  { %v723_v9 = vadd.f32 %v2209_v8, %v1993_v4 }
 0x505   :  { %v717_v10 = vpop.f32.mrf.mxu0 }
 0x506   :  { %v718_v11 = vadd.f32 %v1993_v4, %v717_v10  ;;  %v737_v12 = vmax.f32 %v723_v9, 0.0 }
 0x507   :  { %v2212_v13 = vpop.f32.mrf.mxu0 }
 0x508   :  { %v736_v2 = vmax.f32 %v718_v11, 0.0  ;;  %v733_v14 = vadd.f32 %v2212_v13, %v1993_v4  ;;  %v755_v17 = vmul.f32 %v737_v12, %v737_v12  ;;  %v741_v21 = vsel %vm63_vm0, %v737_v12, 0.0 }
 0x509   :  { %v727_v15 = vpop.f32.mrf.mxu0 }
 0x50a   :  { %v754_v16 = vmul.f32 %v736_v2, %v736_v2  ;;  %v740_v18 = vsel %vm63_vm0, %v736_v2, 0.0  ;;  %v739_v19 = vmax.f32 %v733_v14, 0.0  ;;  %v728_v20 = vadd.f32 %v1993_v4, %v727_v15 }
 0x50b   :  { %v742_v25 = vadd.f32 %v741_v21, %v740_v18  ;;  %v759_v26 = vsel %vm63_vm0, %v755_v17, 0.0 }
 0x50c   :  { %v758_v22 = vsel %vm63_vm0, %v754_v16, 0.0  ;;  %v738_v23 = vmax.f32 %v728_v20, 0.0  ;;  %v757_v27 = vmul.f32 %v739_v19, %v739_v19  ;;  %v745_v32 = vsel %vm63_vm0, %v739_v19, 0.0  ;;  %v2002_v16 = vld [vmem:[#allocation5 + $0x8] ss:$0 sm:$0xff] }
 0x50d   :  { %v760_v30 = vadd.f32 %v759_v26, %v758_v22 }
 0x50e   :  { %v743_v28 = vsel %vm63_vm0, %v738_v23, 0.0  ;;  %v756_v29 = vmul.f32 %v738_v23, %v738_v23  ;;  %v763_v36 = vsel %vm63_vm0, %v757_v27, 0.0  ;;  %v1185_v27 = vld [vmem:[#allocation2 + $0x90] sm:$0xff] }
 0x50f   :  { %v744_v31 = vadd.f32 %v743_v28, %v742_v25  ;;  %v2432_v28 = vmov 0.0  }
 0x510   :  { %v761_v33 = vsel %vm63_vm0, %v756_v29, 0.0  ;;  %v2007_v29 = vld [vmem:[#allocation5 + $0x9] ss:$0 sm:$0xff] }
 0x511   :  { %v746_v34 = vadd.f32 %v745_v32, %v744_v31  ;;  %v762_v35 = vadd.f32 %v761_v33, %v760_v30 }
 0x513   :  { %v747_v38 = vrot.slane %v746_v34, 4  ;;  %v764_v40 = vadd.f32 %v763_v36, %v762_v35 }
 0x515   :  { %v748_v41 = vadd.f32 %v747_v38, %v746_v34  ;;  %v765_v37 = vrot.slane %v764_v40, 4 }
 0x517   :  { %v749_v42 = vrot.slane %v748_v41, 2  ;;  %v766_v39 = vadd.f32 %v765_v37, %v764_v40 }
 0x519   :  { %v750_v43 = vadd.f32 %v749_v42, %v748_v41  ;;  %v767_v44 = vrot.slane %v766_v39, 2 }
 0x51b   :  { %v751_v45 = vrot.slane %v750_v43, 1  ;;  %v768_v46 = vadd.f32 %v767_v44, %v766_v39 }
 0x51d   :  { %v752_v47 = vadd.f32 %v751_v45, %v750_v43  ;;  %v769_v48 = vrot.slane %v768_v46, 1 }
 0x51f   :  { %v753_v49 = vmul.f32 0.03125, %v752_v47  ;;  %v770_v50 = vadd.f32 %v769_v48, %v768_v46 }
 0x521   :  { %v771_v51 = vmul.f32 0.03125, %v770_v50  ;;  %v772_v52 = vmul.f32 %v753_v49, %v753_v49 }
 0x523   :  { %v773_v53 = vsub.f32 %v771_v51, %v772_v52 }
 0x525   :  { %v774_v54 = vmax.f32 %v773_v53, 0.0 }
 0x527   :  { %v775_v55 = vadd.f32 1e-05, %v774_v54 }
 0x529   :  { %2334 = vrsqrt.f32 %v775_v55 }
 0x536   :  { %v2335_v57 = vpop.eup %2334 }
 0x537   :  { %v777_v58 = vmul.f32 %v2335_v57, %v443_v56 }
 0x539   :  { %v778_v60 = vmul.f32 %v777_v58, %v753_v49  ;;  %v783_v61 = vrot.slane %v777_v58, %v2527_v24 }
 0x53b   :  { %v779_v62 = vsub.f32 %v444_v59, %v778_v60  ;;  %v784_v63 = vmul.f32 %v783_v61, %v736_v2  ;;  %v785_v1 = vmul.f32 %v783_v61, %v737_v12  ;;  %v786_v3 = vmul.f32 %v783_v61, %v738_v23  ;;  %v801_v12 = vld [vmem:[#allocation2 + $0x88] sm:$0xff] }
 0x53c   :  { %v787_v10 = vmul.f32 %v783_v61, %v739_v19  ;;  %2241 = vmatprep.subr.mxu1 %v801_v12 }
 0x53d   :  { %v791_v0 = vrot.slane %v779_v62, %v2527_v24 }
 0x53f   :  { %v792_v4 = vadd.f32 %v791_v0, %v784_v63  ;;  %v793_v8 = vadd.f32 %v791_v0, %v785_v1  ;;  %v794_v9 = vadd.f32 %v791_v0, %v786_v3  ;;  %v795_v11 = vadd.f32 %v791_v0, %v787_v10 }
 0x541   :  { %2221 = vmatprep.mubr.msk.f32.mxu1 %vm63_vm0, %v792_v4 }
 0x542   :  { %2222 = vmatmul.mubr.msk.f32.vlgmr.msra.gmra.mxu1 %vm63_vm0, %v793_v8 }
 0x543   :  { %2224 = vmatprep.mubr.msk.f32.mxu1 %vm63_vm0, %v794_v9  ;;  %2242 = vmatpush3.msra.mxu1 %v801_v12 }
 0x544   :  { %2254 = vmatprep.subr.mxu1 %v2432_v28 }
 0x546   :  { %2225 = vmatmul.mubr.msk.f32.gmra.mxu1 %vm63_vm0, %v795_v11 }
 0x602   :  { %v2223_v13 = vpop.f32.mrf.mxu1 }
 0x604   :  { %v883_v14 = vpop.f32.mrf.mxu1 }
 0x606   :  { %v2226_v2 = vpop.f32.mrf.mxu1 }
 0x607   :  { %2227 = vmatprep.subr.mxu0 %v2226_v2 }
 0x608   :  { %v893_v15 = vpop.f32.mrf.mxu1  ;;  %2228 = vmatpush3.msra.mxu0 %v2226_v2 }
 0x609   :  { %2229 = vmatprep.subr.mxu0 %v893_v15 }
 0x60a   :  { %2230 = vmatpush3.msra.mxu0 %v893_v15 }
 0x60b   :  { %2231 = vmatprep.subr.mxu0 %v2223_v13 }
 0x60c   :  { %2232 = vmatpush3.msra.mxu0 %v2223_v13 }
 0x60d   :  { %2233 = vmatprep.subr.mxu0 %v883_v14 }
 0x60e   :  { %2234 = vmatpush3.msra.mxu0 %v883_v14 }
 0x60f   :  { %2236 = vmatmul.mubr.msk.f32.vlgmr.msra.gmra.mxu0 %vm63_vm0, %v2490_v5  ;;  %2249 = vmatprep.subr.mxu0 %v2432_v28 }
 0x610   :  { %2238 = vmatprep.mubr.msk.f32.mxu0 %vm63_vm0, %v2495_v6  ;;  %2250 = vmatpush3.msra.mxu0 %v1185_v27 }
 0x611   :  { %2261 = vmatprep.subr.mxu0 %v2432_v28 }
 0x613   :  { %2239 = vmatmul.mubr.msk.f32.gmra.mxu0 %vm63_vm0, %v2504_v7 }
 0x614   :  { %2251 = vmatprep.mubr.msk.f32.mxu0 %vm2433_vm4, %v2432_v28 }
 0x6cf   :  { %v2237_v17 = vpop.f32.mrf.mxu0 }
 0x6d0   :  { %v978_v18 = vadd.f32 %v2237_v17, %v2002_v16  ;;  %v803_v17 = vld [vmem:[#allocation5 + $0xa] sm:$0x1] }
 0x6d1   :  { %v972_v19 = vpop.f32.mrf.mxu0 }
 0x6d2   :  { %v973_v20 = vadd.f32 %v2002_v16, %v972_v19  ;;  %v992_v23 = vmax.f32 %v978_v18, 0.0 }
 0x6d3   :  { %v2240_v21 = vpop.f32.mrf.mxu0 }
 0x6d4   :  { %v991_v22 = vmax.f32 %v973_v20, 0.0  ;;  %v988_v25 = vadd.f32 %v2240_v21, %v2002_v16  ;;  %v804_v20 = vld [vmem:[#allocation5 + $0xb] sm:$0x1] }
 0x6d5   :  { %v982_v5 = vpop.f32.mrf.mxu0 }
 0x6d6   :  { %v983_v26 = vadd.f32 %v2002_v16, %v982_v5  ;;  %2243 = vmatprep.mubr.msk.f32.mxu1 %vm999_vm3, %v991_v22  ;;  %v994_v7 = vmax.f32 %v988_v25, 0.0 }
 0x6d7   :  { %2244 = vmatmul.mubr.msk.f32.vlgmr.msra.gmra.mxu1 %vm999_vm3, %v992_v23 }
 0x6d8   :  { %v993_v6 = vmax.f32 %v983_v26, 0.0 }
 0x6da   :  { %2246 = vmatprep.mubr.msk.f32.mxu1 %vm999_vm3, %v993_v6 }
 0x6db   :  { %2247 = vmatmul.mubr.msk.f32.gmra.mxu1 %vm999_vm3, %v994_v7 }
 0x6dc   :  { %2258 = vmatprep.mubr.msk.f32.mxu1 %vm2433_vm4, %v2432_v28 }
 0x797   :  { %v2245_v30 = vpop.f32.mrf.mxu1 }
 0x798   :  { %v1084_v31 = vadd.f32 %v2245_v30, %v2007_v29 }
 0x799   :  { %v1078_v32 = vpop.f32.mrf.mxu1 }
 0x79a   :  { %v1079_v33 = vadd.f32 %v2007_v29, %v1078_v32  ;;  %v1098_v34 = vmax.f32 %v1084_v31, 0.0 }
 0x79b   :  { %v2248_v35 = vpop.f32.mrf.mxu1 }
 0x79c   :  { %v1097_v36 = vmax.f32 %v1079_v33, 0.0  ;;  %v1094_v38 = vadd.f32 %v2248_v35, %v2007_v29  ;;  %v1116_v37 = vmul.f32 %v1098_v34, %v1098_v34  ;;  %v1102_v44 = vsel %vm999_vm3, %v1098_v34, 0.0 }
 0x79d   :  { %v1088_v40 = vpop.f32.mrf.mxu1 }
 0x79e   :  { %v1115_v41 = vmul.f32 %v1097_v36, %v1097_v36  ;;  %v1101_v42 = vsel %vm999_vm3, %v1097_v36, 0.0  ;;  %v1100_v39 = vmax.f32 %v1094_v38, 0.0  ;;  %v1089_v43 = vadd.f32 %v2007_v29, %v1088_v40 }
 0x79f   :  { %v1103_v47 = vadd.f32 %v1102_v44, %v1101_v42  ;;  %v1120_v48 = vsel %vm999_vm3, %v1116_v37, 0.0 }
 0x7a0   :  { %v1119_v45 = vsel %vm999_vm3, %v1115_v41, 0.0  ;;  %v1099_v46 = vmax.f32 %v1089_v43, 0.0  ;;  %v1118_v49 = vmul.f32 %v1100_v39, %v1100_v39  ;;  %v1106_v54 = vsel %vm999_vm3, %v1100_v39, 0.0 }
 0x7a1   :  { %v1121_v52 = vadd.f32 %v1120_v48, %v1119_v45 }
 0x7a2   :  { %v1104_v50 = vsel %vm999_vm3, %v1099_v46, 0.0  ;;  %v1117_v51 = vmul.f32 %v1099_v46, %v1099_v46  ;;  %v1124_v58 = vsel %vm999_vm3, %v1118_v49, 0.0 }
 0x7a3   :  { %v1105_v53 = vadd.f32 %v1104_v50, %v1103_v47 }
 0x7a4   :  { %v1122_v55 = vsel %vm999_vm3, %v1117_v51, 0.0 }
 0x7a5   :  { %v1107_v56 = vadd.f32 %v1106_v54, %v1105_v53  ;;  %v1123_v57 = vadd.f32 %v1122_v55, %v1121_v52 }
 0x7a7   :  { %v1108_v59 = vrot.slane %v1107_v56, 4  ;;  %v1125_v60 = vadd.f32 %v1124_v58, %v1123_v57 }
 0x7a9   :  { %v1109_v61 = vadd.f32 %v1108_v59, %v1107_v56  ;;  %v1126_v62 = vrot.slane %v1125_v60, 4 }
 0x7ab   :  { %v1110_v63 = vrot.slane %v1109_v61, 2  ;;  %v1127_v0 = vadd.f32 %v1126_v62, %v1125_v60  ;;  %v2012_v62 = vld [vmem:[#allocation5 + $0xc] ss:$0 sm:$0xff] }
 0x7ad   :  { %v1111_v1 = vadd.f32 %v1110_v63, %v1109_v61  ;;  %v1128_v3 = vrot.slane %v1127_v0, 2 }
 0x7af   :  { %v1112_v4 = vrot.slane %v1111_v1, 1  ;;  %v1129_v8 = vadd.f32 %v1128_v3, %v1127_v0 }
 0x7b1   :  { %v1113_v9 = vadd.f32 %v1112_v4, %v1111_v1  ;;  %v1130_v10 = vrot.slane %v1129_v8, 1 }
 0x7b3   :  { %v1114_v11 = vmul.f32 0.03125, %v1113_v9  ;;  %v1131_v13 = vadd.f32 %v1130_v10, %v1129_v8  ;;  %v2015_v9 = vld [vmem:[#allocation5 + $0xd] ss:$0 sm:$0xff] }
 0x7b5   :  { %v1132_v14 = vmul.f32 0.03125, %v1131_v13  ;;  %v1133_v2 = vmul.f32 %v1114_v11, %v1114_v11 }
 0x7b7   :  { %v1134_v15 = vsub.f32 %v1132_v14, %v1133_v2  ;;  %v1298_v2 = vld [vmem:[#allocation2 + $0xa0] sm:$0xff] }
 0x7b8   :  { %2255 = vmatpush3.msra.mxu1 %v1298_v2 }
 0x7b9   :  { %v1135_v12 = vmax.f32 %v1134_v15, 0.0  ;;  %v1297_v15 = vld [vmem:[#allocation2 + $0x98] sm:$0xff]  ;;  %2256 = vmatprep.subr.mxu1 %v2432_v28 }
 0x7ba   :  { %2257 = vmatpush3.msra.mxu1 %v1297_v15 }
 0x7bb   :  { %v1136_v16 = vadd.f32 1e-05, %v1135_v12  ;;  %2268 = vmatprep.subr.mxu1 %v2432_v28 }
 0x7bd   :  { %2336 = vrsqrt.f32 %v1136_v16 }
 0x7ca   :  { %v2337_v18 = vpop.eup %2336 }
 0x7cb   :  { %v1138_v19 = vmul.f32 %v2337_v18, %v803_v17 }
 0x7cd   :  { %v1139_v21 = vmul.f32 %v1138_v19, %v1114_v11  ;;  %v1144_v22 = vrot.slane %v1138_v19, %v2527_v24 }
 0x7cf   :  { %v1140_v23 = vsub.f32 %v804_v20, %v1139_v21  ;;  %v1145_v25 = vmul.f32 %v1144_v22, %v1097_v36  ;;  %v1146_v5 = vmul.f32 %v1144_v22, %v1098_v34  ;;  %v1147_v26 = vmul.f32 %v1144_v22, %v1099_v46  ;;  %v2016_v20 = vld [vmem:[#allocation5 + $0xe] ss:$0 sm:$0xff] }
 0x7d0   :  { %v1148_v6 = vmul.f32 %v1144_v22, %v1100_v39 }
 0x7d1   :  { %v1152_v7 = vrot.slane %v1140_v23, %v2527_v24 }
 0x7d3   :  { %v1153_v27 = vadd.f32 %v1152_v7, %v1145_v25  ;;  %v1154_v29 = vadd.f32 %v1152_v7, %v1146_v5  ;;  %v1155_v30 = vadd.f32 %v1152_v7, %v1147_v26  ;;  %v1156_v31 = vadd.f32 %v1152_v7, %v1148_v6  ;;  %v2019_v6 = vld [vmem:[#allocation5 + $0xf] ss:$0 sm:$0xff] }
 0x7d5   :  { %v1171_v32 = vsel %vm999_vm3, %v1155_v30, -inf  ;;  %v1157_v33 = vsel %vm999_vm3, %v1153_v27, -inf  ;;  %v1164_v35 = vsel %vm999_vm3, %v1154_v29, -inf  ;;  %v1178_v38 = vsel %vm999_vm3, %v1156_v31, -inf  ;;  %v1405_v31 = vld [vmem:[#allocation2 + $0xb0] sm:$0xff] }
 0x7d6   :  { %v1172_v40 = vrot.slane %v1171_v32, 4  ;;  %v1158_v41 = vrot.slane %v1157_v33, 4  ;;  %v1165_v36 = vrot.slane %v1164_v35, 4  ;;  %v1179_v34 = vrot.slane %v1178_v38, 4 }
 0x7d8   :  { %v1173_v37 = vmax.f32 %v1171_v32, %v1172_v40  ;;  %v1159_v42 = vmax.f32 %v1157_v33, %v1158_v41  ;;  %v1166_v39 = vmax.f32 %v1164_v35, %v1165_v36  ;;  %v1180_v24 = vmax.f32 %v1178_v38, %v1179_v34  ;;  %v1404_v32 = vld [vmem:[#allocation2 + $0xa8] sm:$0xff] }
 0x7d9   :  { %v2020_v36 = vld [vmem:[#allocation5 + $0x10] ss:$0 sm:$0xff] }
 0x7da   :  { %v1174_v43 = vrot.slane %v1173_v37, 2  ;;  %v1160_v44 = vrot.slane %v1159_v42, 2  ;;  %v1167_v45 = vrot.slane %v1166_v39, 2  ;;  %v1181_v46 = vrot.slane %v1180_v24, 2 }
 0x7dc   :  { %v1175_v47 = vmax.f32 %v1173_v37, %v1174_v43  ;;  %v1161_v48 = vmax.f32 %v1159_v42, %v1160_v44  ;;  %v1168_v49 = vmax.f32 %v1166_v39, %v1167_v45  ;;  %v1182_v50 = vmax.f32 %v1180_v24, %v1181_v46  ;;  %v2023_v44 = vld [vmem:[#allocation5 + $0x11] ss:$0 sm:$0xff] }
 0x7de   :  { %v1176_v51 = vrot.slane %v1175_v47, 1  ;;  %v1162_v52 = vrot.slane %v1161_v48, 1  ;;  %v1169_v53 = vrot.slane %v1168_v49, 1  ;;  %v1183_v54 = vrot.slane %v1182_v50, 1 }
 0x7e0   :  { %v1177_v55 = vmax.f32 %v1175_v47, %v1176_v51  ;;  %v1163_v56 = vmax.f32 %v1161_v48, %v1162_v52  ;;  %v1170_v57 = vmax.f32 %v1168_v49, %v1169_v53  ;;  %v1184_v58 = vmax.f32 %v1182_v50, %v1183_v54  ;;  %v1511_v49 = vld [vmem:[#allocation2 + $0xc0] sm:$0xff]  ;;  %v1510_v50 = vld [vmem:[#allocation2 + $0xb8] sm:$0xff] }
 0x7e2   :  { %v1196_v59 = vsel %vm1195_vm5, %v1170_v57, %v1163_v56  ;;  %v2024_v56 = vld [vmem:[#allocation5 + $0x12] ss:$0 sm:$0xff] }
 0x7e3   :  { %v1198_v60 = vsel %vm1197_vm6, %v1177_v55, %v1196_v59 }
 0x7e4   :  { %v1200_v61 = vsel %vm1199_vm7, %v1184_v58, %v1198_v60 }
 0x7e5   :  { %2252 = vmatmul.mubr.msk.f32.vlgmr.msra.gmra.mxu0 %vm999_vm3, %v1200_v61 }
 0x7e6   :  { %2265 = vmatprep.mubr.msk.f32.mxu0 %vm2433_vm4, %v2432_v28  ;;  %2262 = vmatpush3.msra.mxu0 %v1405_v31  ;;  %v2030_v31 = vld [vmem:[#allocation5 + $0x15] ss:$0 sm:$0xff] }
 0x7e7   :  { %2263 = vmatprep.subr.mxu0 %v2432_v28 }
 0x7e8   :  { %2264 = vmatpush3.msra.mxu0 %v1404_v32 }
 0x7e9   :  { %2275 = vmatprep.subr.mxu0 %v2432_v28 }
 0x8a5   :  { %v1269_v63 = vpop.f32.mrf.mxu0 }
 0x8a6   :  { %v1270_v0 = vadd.f32 %v2012_v62, %v1269_v63  ;;  %v2027_v63 = vld [vmem:[#allocation5 + $0x13] ss:$0 sm:$0xff] }
 0x8a7   :  { %v2253_v1 = vpop.f32.mrf.mxu0 }
 0x8a8   :  { %v2014_v3 = vmul.f32 -1.442695, %v1270_v0 }
 0x8aa   :  { %2338 = vpow2.f32 %v2014_v3 }
 0x8b7   :  { %v2339_v4 = vpop.eup %2338 }
 0x8b8   :  { %v1276_v8 = vadd.f32 1.0, %v2339_v4 }
 0x8ba   :  { %2340 = vrcp.f32 %v1276_v8  ;;  %v1617_v8 = vld [vmem:[#allocation2 + $0xd0] sm:$0xff] }
 0x8c7   :  { %v2341_v10 = vpop.eup %2340 }
 0x8c8   :  { %v1284_v11 = vmul.f32 %v2341_v10, %v2015_v9  ;;  %v1291_v16 = vsub.f32 1.0, %v2341_v10  ;;  %v1616_v9 = vld [vmem:[#allocation2 + $0xc8] sm:$0xff] }
 0x8ca   :  { %1286 = vrot.lane.b32.xlu0 %v1284_v11, %s2434_s0  ;;  %v1702_v11 = vld [vmem:[#allocation2 + $0xf0] sm:$0xff] }
 0x93c   :  { %v1287_v13 = vpop.permute.xlu0 %1286 }
 0x93d   :  { %v1289_v14 = vadd.f32 %v1287_v13, %v1270_v0 }
 0x93f   :  { %2342 = vtanh.f32 %v1289_v14 }
 0x94c   :  { %v2343_v12 = vpop.eup %2342 }
 0x94d   :  { %1293 = vrot.lane.b32.xlu0 %v2343_v12, %s2435_s14  ;;  %v1701_v12 = vld [vmem:[#allocation2 + $0xe8] sm:$0xff] }
 0x9bf   :  { %v1294_v17 = vpop.permute.xlu0 %1293 }
 0x9c0   :  { %v1296_v18 = vmul.f32 %v1294_v17, %v1291_v16  ;;  %v1700_v16 = vld [vmem:[#allocation2 + $0xe0] sm:$0xff]  ;;  %v1699_v17 = vld [vmem:[#allocation2 + $0xd8] sm:$0xff] }
 0x9c2   :  { %1305 = vrot.lane.b32.xlu1 %v1296_v18, %s2435_s14  ;;  %v1785_v18 = vld [vmem:[#allocation2 + $0x110] sm:$0xff] }
 0xa34   :  { %v1306_v19 = vpop.permute.xlu1 %1305 }
 0xa35   :  { %2259 = vmatmul.mubr.msk.f32.vlgmr.msra.gmra.mxu1 %vm1307_vm8, %v1306_v19  ;;  %v2028_v19 = vld [vmem:[#allocation5 + $0x14] ss:$0 sm:$0xff] }
 0xa36   :  { %2272 = vmatprep.mubr.msk.f32.mxu1 %vm2433_vm4, %v2432_v28  ;;  %2269 = vmatpush3.msra.mxu1 %v1511_v49 }
 0xa37   :  { %2270 = vmatprep.subr.mxu1 %v2432_v28 }
 0xa38   :  { %2271 = vmatpush3.msra.mxu1 %v1510_v50 }
 0xa39   :  { %2282 = vmatprep.subr.mxu1 %v2432_v28 }
 0xaf5   :  { %v1376_v21 = vpop.f32.mrf.mxu1 }
 0xaf6   :  { %v1377_v22 = vadd.f32 %v2016_v20, %v1376_v21 }
 0xaf7   :  { %v2260_v23 = vpop.f32.mrf.mxu1 }
 0xaf8   :  { %v2018_v25 = vmul.f32 -1.442695, %v1377_v22 }
 0xafa   :  { %2344 = vpow2.f32 %v2018_v25  ;;  %v1784_v25 = vld [vmem:[#allocation2 + $0x108] sm:$0xff] }
 0xb07   :  { %v2345_v5 = vpop.eup %2344 }
 0xb08   :  { %v1383_v26 = vadd.f32 1.0, %v2345_v5  ;;  %v1783_v5 = vld [vmem:[#allocation2 + $0x100] sm:$0xff] }
 0xb0a   :  { %2346 = vrcp.f32 %v1383_v26  ;;  %v1782_v26 = vld [vmem:[#allocation2 + $0xf8] sm:$0xff] }
 0xb17   :  { %v2347_v7 = vpop.eup %2346 }
 0xb18   :  { %v1391_v27 = vmul.f32 %v2347_v7, %v2019_v6  ;;  %v1398_v35 = vsub.f32 1.0, %v2347_v7  ;;  %v1872_v6 = vld [vmem:[#allocation2 + $0x150] sm:$0xff]  ;;  %v1871_v7 = vld [vmem:[#allocation2 + $0x148] sm:$0xff] }
 0xb1a   :  { %1393 = vrot.lane.b32.xlu1 %v1391_v27, %s2434_s0  ;;  %v1870_v27 = vld [vmem:[#allocation2 + $0x140] sm:$0xff] }
 0xb8c   :  { %v1394_v29 = vpop.permute.xlu1 %1393 }
 0xb8d   :  { %v1396_v30 = vadd.f32 %v1394_v29, %v1377_v22  ;;  %v1869_v29 = vld [vmem:[#allocation2 + $0x138] sm:$0xff] }
 0xb8f   :  { %2348 = vtanh.f32 %v1396_v30  ;;  %v1868_v30 = vld [vmem:[#allocation2 + $0x130] sm:$0xff] }
 0xb9c   :  { %v2349_v33 = vpop.eup %2348 }
 0xb9d   :  { %1400 = vrot.lane.b32.xlu0 %v2349_v33, %s2435_s14 }
 0xc0f   :  { %v1401_v38 = vpop.permute.xlu0 %1400 }
 0xc10   :  { %v1403_v40 = vmul.f32 %v1401_v38, %v1398_v35 }
 0xc12   :  { %1412 = vrot.lane.b32.xlu1 %v1403_v40, %s2435_s14  ;;  %v1867_v40 = vld [vmem:[#allocation2 + $0x128] sm:$0xff] }
 0xc84   :  { %v1413_v41 = vpop.permute.xlu1 %1412 }
 0xc85   :  { %2266 = vmatmul.mubr.msk.f32.vlgmr.msra.gmra.mxu0 %vm1307_vm8, %v1413_v41  ;;  %v1866_v41 = vld [vmem:[#allocation2 + $0x120] sm:$0xff] }
 0xc86   :  { %2279 = vmatprep.mubr.msk.f32.mxu0 %vm2433_vm4, %v2432_v28  ;;  %2276 = vmatpush3.msra.mxu0 %v1617_v8 }
 0xc87   :  { %2277 = vmatprep.subr.mxu0 %v2432_v28 }
 0xc88   :  { %2278 = vmatpush3.msra.mxu0 %v1616_v9 }
 0xc89   :  { %2293 = vmatprep.subr.mxu0 %v2432_v28 }
 0xd45   :  { %v1482_v34 = vpop.f32.mrf.mxu0 }
 0xd46   :  { %v1483_v37 = vadd.f32 %v2020_v36, %v1482_v34  ;;  %v1865_v36 = vld [vmem:[#allocation2 + $0x118] sm:$0xff]  ;;  %v2032_v34 = vld [vmem:[#allocation5 + $0x16] ss:$0 sm:$0xff] }
 0xd47   :  { %v2267_v42 = vpop.f32.mrf.mxu0 }
 0xd48   :  { %v2022_v39 = vmul.f32 -1.442695, %v1483_v37 }
 0xd4a   :  { %2350 = vpow2.f32 %v2022_v39 }
 0xd57   :  { %v2351_v24 = vpop.eup %2350 }
 0xd58   :  { %v1489_v43 = vadd.f32 1.0, %v2351_v24 }
 0xd5a   :  { %2352 = vrcp.f32 %v1489_v43  ;;  %v2034_v43 = vld [vmem:[#allocation5 + $0x17] ss:$0 sm:$0xff] }
 0xd67   :  { %v2353_v45 = vpop.eup %2352 }
 0xd68   :  { %v1497_v46 = vmul.f32 %v2353_v45, %v2023_v44  ;;  %v1504_v52 = vsub.f32 1.0, %v2353_v45 }
 0xd6a   :  { %1499 = vrot.lane.b32.xlu0 %v1497_v46, %s2434_s0 }
 0xddc   :  { %v1500_v47 = vpop.permute.xlu0 %1499 }
 0xddd   :  { %v1502_v48 = vadd.f32 %v1500_v47, %v1483_v37 }
 0xddf   :  { %2354 = vtanh.f32 %v1502_v48 }
 0xdec   :  { %v2355_v51 = vpop.eup %2354 }
 0xded   :  { %1506 = vrot.lane.b32.xlu1 %v2355_v51, %s2435_s14 }
 0xe5f   :  { %v1507_v53 = vpop.permute.xlu1 %1506 }
 0xe60   :  { %v1509_v54 = vmul.f32 %v1507_v53, %v1504_v52 }
 0xe62   :  { %1518 = vrot.lane.b32.xlu0 %v1509_v54, %s2435_s14 }
 0xed4   :  { %v1519_v55 = vpop.permute.xlu0 %1518 }
 0xed5   :  { %2273 = vmatmul.mubr.msk.f32.vlgmr.msra.gmra.mxu1 %vm1307_vm8, %v1519_v55 }
 0xed6   :  { %2290 = vmatprep.mubr.msk.f32.mxu1 %vm2433_vm4, %v2432_v28  ;;  %2283 = vmatpush3.msra.mxu1 %v1702_v11 }
 0xed7   :  { %2284 = vmatprep.subr.mxu1 %v2432_v28 }
 0xed8   :  { %2285 = vmatpush3.msra.mxu1 %v1701_v12 }
 0xed9   :  { %2286 = vmatprep.subr.mxu1 %v2432_v28 }
 0xeda   :  { %2287 = vmatpush3.msra.mxu1 %v1700_v16 }
 0xedb   :  { %2288 = vmatprep.subr.mxu1 %v2432_v28 }
 0xedc   :  { %2289 = vmatpush3.msra.mxu1 %v1699_v17 }
 0xedd   :  { %2304 = vmatprep.subr.mxu1 %v2432_v28 }
 0xf95   :  { %v1588_v57 = vpop.f32.mrf.mxu1 }
 0xf96   :  { %v1589_v58 = vadd.f32 %v2024_v56, %v1588_v57 }
 0xf97   :  { %v2274_v59 = vpop.f32.mrf.mxu1 }
 0xf98   :  { %v2026_v60 = vmul.f32 -1.442695, %v1589_v58 }
 0xf9a   :  { %2356 = vpow2.f32 %v2026_v60 }
 0xfa7   :  { %v2357_v61 = vpop.eup %2356 }
 0xfa8   :  { %v1595_v62 = vadd.f32 1.0, %v2357_v61 }
 0xfaa   :  { %2358 = vrcp.f32 %v1595_v62 }
 0xfb7   :  { %v2359_v0 = vpop.eup %2358 }
 0xfb8   :  { %v1603_v1 = vmul.f32 %v2359_v0, %v2027_v63  ;;  %v1610_v13 = vsub.f32 1.0, %v2359_v0 }
 0xfba   :  { %1605 = vrot.lane.b32.xlu1 %v1603_v1, %s2434_s0 }
0x102c   :  { %v1606_v3 = vpop.permute.xlu1 %1605 }
0x102d   :  { %v1608_v4 = vadd.f32 %v1606_v3, %v1589_v58 }
0x102f   :  { %2360 = vtanh.f32 %v1608_v4 }
0x103c   :  { %v2361_v10 = vpop.eup %2360 }
0x103d   :  { %1612 = vrot.lane.b32.xlu0 %v2361_v10, %s2435_s14 }
0x10af   :  { %v1613_v14 = vpop.permute.xlu0 %1612 }
0x10b0   :  { %v1615_v2 = vmul.f32 %v1613_v14, %v1610_v13 }
0x10b2   :  { %1624 = vrot.lane.b32.xlu1 %v1615_v2, %s2435_s14 }
0x1124   :  { %v1625_v15 = vpop.permute.xlu1 %1624 }
0x1125   :  { %2280 = vmatmul.mubr.msk.f32.vlgmr.msra.gmra.mxu0 %vm1307_vm8, %v1625_v15 }
0x1126   :  { %2301 = vmatprep.mubr.msk.f32.mxu0 %vm2433_vm4, %v2432_v28  ;;  %2294 = vmatpush3.msra.mxu0 %v1785_v18 }
0x1127   :  { %2295 = vmatprep.subr.mxu0 %v2432_v28 }
0x1128   :  { %2296 = vmatpush3.msra.mxu0 %v1784_v25 }
0x1129   :  { %2297 = vmatprep.subr.mxu0 %v2432_v28 }
0x112a   :  { %2298 = vmatpush3.msra.mxu0 %v1783_v5 }
0x112b   :  { %2299 = vmatprep.subr.mxu0 %v2432_v28 }
0x112c   :  { %2300 = vmatpush3.msra.mxu0 %v1782_v26 }
0x11e5   :  { %v1694_v20 = vpop.f32.mrf.mxu0 }
0x11e6   :  { %v1695_v21 = vadd.f32 %v2028_v19, %v1694_v20 }
0x11e7   :  { %v2281_v22 = vpop.f32.mrf.mxu0 }
0x11e8   :  { %v1698_v23 = vmax.f32 %v1695_v21, 0.0 }
0x11ea   :  { %2291 = vmatmul.mubr.msk.f32.vlgmr.msra.gmra.mxu1 %vm63_vm0, %v1698_v23 }
0x11eb   :  { %2320 = vmatprep.mubr.msk.f32.mxu1 %vm2433_vm4, %v2432_v28  ;;  %2305 = vmatpush3.msra.mxu1 %v1872_v6 }
0x11ec   :  { %2306 = vmatprep.subr.mxu1 %v2432_v28 }
0x11ed   :  { %2307 = vmatpush3.msra.mxu1 %v1871_v7 }
0x11ee   :  { %2308 = vmatprep.subr.mxu1 %v2432_v28 }
0x11ef   :  { %2309 = vmatpush3.msra.mxu1 %v1870_v27 }
0x11f0   :  { %2310 = vmatprep.subr.mxu1 %v2432_v28 }
0x11f1   :  { %2311 = vmatpush3.msra.mxu1 %v1869_v29 }
0x11f2   :  { %2312 = vmatprep.subr.mxu1 %v2432_v28 }
0x11f3   :  { %2313 = vmatpush3.msra.mxu1 %v1868_v30 }
0x11f4   :  { %2314 = vmatprep.subr.mxu1 %v2432_v28 }
0x11f5   :  { %2315 = vmatpush3.msra.mxu1 %v1867_v40 }
0x11f6   :  { %2316 = vmatprep.subr.mxu1 %v2432_v28 }
0x11f7   :  { %2317 = vmatpush3.msra.mxu1 %v1866_v41 }
0x11f8   :  { %2318 = vmatprep.subr.mxu1 %v2432_v28 }
0x11f9   :  { %2319 = vmatpush3.msra.mxu1 %v1865_v36 }
0x12aa   :  { %v1777_v32 = vpop.f32.mrf.mxu1 }
0x12ab   :  { %v1778_v33 = vadd.f32 %v2030_v31, %v1777_v32 }
0x12ac   :  { %v2292_v35 = vpop.f32.mrf.mxu1 }
0x12ad   :  { %v1781_v38 = vmax.f32 %v1778_v33, 0.0 }
0x12af   :  { %2302 = vmatmul.mubr.msk.f32.vlgmr.msra.gmra.mxu0 %vm63_vm0, %v1781_v38 }
0x136f   :  { %v1860_v37 = vpop.f32.mrf.mxu0 }
0x1370   :  { %v1861_v42 = vadd.f32 %v2032_v34, %v1860_v37 }
0x1371   :  { %v2303_v39 = vpop.f32.mrf.mxu0 }
0x1372   :  { %v1864_v24 = vmax.f32 %v1861_v42, 0.0 }
0x1374   :  { %2321 = vmatmul.mubr.msk.f32.vlgmr.msra.gmra.mxu1 %vm1878_vm9, %v1864_v24 }
0x1434   :  { %v1948_v44 = vpop.f32.mrf.mxu1 }
0x1435   :  { %v1949_v45 = vadd.f32 %v2034_v43, %v1948_v44 }
0x1436   :  { %v2322_v46 = vpop.f32.mrf.mxu1 }
0x1437   :  { %1952 = vst [vmem:[#allocation7] sm:$0xf] %v1949_v45 }
0x1438   :  { %2413 = shalt.err (!%p2410_p0)
}
0x1439   :  { %1962 = dma.vmem_to_hbm [thread:$0]  %s1960_s16, 64, %s2653_s4, [#allocation4]  }
0x143a   :  { %2426 = dma.done.wait [#allocation4], 64  }
0x143b   :  { %2427 = vsyncadd [#allocation4], 4294967232 }
0x143c   :  { %1966 = vsyncpa [#allocation3], 1 }
0x143d   :  { %1967 = vsyncpa [#allocation6], 1 }
0x143e   :  { %1968 = vsyncpa [#allocation4], 1 }

</bundles_post_ra>
